<compile_context>
chip_gen: v6e
topology: v6e:2x2x1
jax: 0.10.0
libtpu: 0.0.40
codegen_flags: <defaults>
</compile_context>

<pallas_src>
import functools

import jax
import jax.numpy as jnp
import numpy as np
from jax.experimental import pallas as pl
from jax.experimental.pallas import tpu as pltpu


def convlstm_cell_kernel(x_ref, h_ref, c_ref, w_ref, b_ref,
                         h_out_ref, c_out_ref, patch_ref,
                         *, H, W, KH, KW, input_dim, hidden_dim):
    """Fused ConvLSTM cell for one batch element (channel-major layout).

    x_ref     : (1, Cx,  M)   input frame,  M = H*W pixels in lanes
    h_ref     : (1, hid, M)   previous hidden state
    c_ref     : (1, hid, M)   previous cell state
    w_ref     : (4*hid, K)    conv weights, K = KH*KW*(Cx+hid), matmul dtype
    b_ref     : (4*hid, 1)    conv bias (f32)
    h_out_ref : (1, hid, M)   next hidden state
    c_out_ref : (1, hid, M)   next cell state
    patch_ref : (K, M) VMEM   im2col patch matrix (matmul dtype)
    """
    M = H * W
    Cx = input_dim
    hid = hidden_dim
    Cin = Cx + hid
    ph, pw = KH // 2, KW // 2
    cdt = patch_ref.dtype

    # ---------------- im2col: assemble the (K, M) patch matrix -------------
    # Zero every grid step: cheap (~tens of vreg stores) and correct under
    # megacore "parallel" sharding where each core owns a private scratch.
    patch_ref[...] = jnp.zeros_like(patch_ref)

    x_flat = x_ref[0].astype(cdt)          # (Cx,  M)
    h_flat = h_ref[0].astype(cdt)          # (hid, M)

    # Horizontal-boundary masks, one per kernel-column offset.  Hoisted out of
    # the tap loop (broadcasts/iota are not CSE'd if left inside).
    col = jax.lax.broadcasted_iota(jnp.int32, (1, M), 1) % W
    col_ok = {}
    for ks in range(KW):
        dx = ks - pw
        col_ok[dx] = jnp.logical_and(col + dx >= 0, col + dx < W)   # (1, M)

    for kr in range(KH):
        dy = kr - ph
        for ks in range(KW):
            dx = ks - pw
            t = kr * KW + ks                 # tap index
            d = dy * W + dx                  # flat pixel shift of this tap
            dst0 = max(0, -d)                # static lane window where the
            dst1 = min(M, M - d)             # shifted source stays in [0, M)
            src0, src1 = dst0 + d, dst1 + d
            mask = col_ok[dx][:, dst0:dst1]
            # combined = cat([x, h], channel): x channels first, then h.
            patch_ref[t * Cin:t * Cin + Cx, dst0:dst1] = jnp.where(
                mask, x_flat[:, src0:src1], 0)
            patch_ref[t * Cin + Cx:(t + 1) * Cin, dst0:dst1] = jnp.where(
                mask, h_flat[:, src0:src1], 0)

    # ---------------- one MXU matmul for all four gates ---------------------
    # (4*hid, K) x (K, M) -> (4*hid, M), accumulated in f32 inside the MXU.
    acc = jnp.dot(w_ref[...], patch_ref[...],
                  preferred_element_type=jnp.float32)
    acc = acc + b_ref[...].astype(jnp.float32)

    # ---------------- LSTM gating (f32, dense 256-lane slabs) ---------------
    g_i = jax.nn.sigmoid(acc[0 * hid:1 * hid, :])
    g_f = jax.nn.sigmoid(acc[1 * hid:2 * hid, :])
    g_o = jax.nn.sigmoid(acc[2 * hid:3 * hid, :])
    g_g = jnp.tanh(acc[3 * hid:4 * hid, :])

    c_cur = c_ref[0].astype(jnp.float32)
    c_next = g_f * c_cur + g_i * g_g
    h_next = g_o * jnp.tanh(c_next)

    c_out_ref[0] = c_next.astype(c_out_ref.dtype)
    h_out_ref[0] = h_next.astype(h_out_ref.dtype)


def convlstm_cell_forward(x_nchw, h_nchw, c_nchw, weight_oihw, bias,
                          kernel_size, *, compute_dtype=jnp.bfloat16):
    """Pallas ConvLSTMCell.forward.  Inputs/outputs are NCHW like PyTorch."""
    KH, KW = kernel_size
    if KH % 2 != 1 or KW % 2 != 1:
        # padding = (KH//2, KW//2) only reproduces 'same' conv for odd kernels.
        raise NotImplementedError("odd kernel sizes only")
    B, Cx, H, W = x_nchw.shape
    hid = h_nchw.shape[1]
    Cin = Cx + hid
    Cout = 4 * hid
    M = H * W
    K = KH * KW * Cin

    # Only free reshapes here -- no transpose / concat / pad, hence no extra
    # HBM round trips before the kernel runs.
    x2 = x_nchw.reshape(B, Cx, M)
    h2 = h_nchw.reshape(B, hid, M)
    c2 = c_nchw.reshape(B, hid, M)

    # One-time parameter repack: (Cout, Cin, KH, KW) -> (Cout, K) with K
    # ordered (kr, ks, ci) to match the patch rows built in the kernel.
    w_t = jnp.transpose(weight_oihw, (0, 2, 3, 1)).reshape(Cout, K)
    w_t = w_t.astype(compute_dtype)
    b2 = bias.reshape(Cout, 1).astype(jnp.float32)

    kern = functools.partial(convlstm_cell_kernel, H=H, W=W, KH=KH, KW=KW,
                             input_dim=Cx, hidden_dim=hid)

    h_next, c_next = pl.pallas_call(
        kern,
        out_shape=(
            jax.ShapeDtypeStruct((B, hid, M), x_nchw.dtype),
            jax.ShapeDtypeStruct((B, hid, M), x_nchw.dtype),
        ),
        grid=(B,),
        in_specs=[
            pl.BlockSpec((1, Cx, M), lambda b: (b, 0, 0)),
            pl.BlockSpec((1, hid, M), lambda b: (b, 0, 0)),
            pl.BlockSpec((1, hid, M), lambda b: (b, 0, 0)),
            pl.BlockSpec((Cout, K), lambda b: (0, 0)),   # resident across steps
            pl.BlockSpec((Cout, 1), lambda b: (0, 0)),
        ],
        out_specs=(
            pl.BlockSpec((1, hid, M), lambda b: (b, 0, 0)),
            pl.BlockSpec((1, hid, M), lambda b: (b, 0, 0)),
        ),
        scratch_shapes=[pltpu.VMEM((K, M), compute_dtype)],
        compiler_params=pltpu.CompilerParams(
            dimension_semantics=("parallel",)),
    )(x2, h2, c2, w_t, b2)

    # Channel-major (C, H*W) is exactly NCHW flattened -> free reshapes back.
    return (h_next.reshape(B, hid, H, W), c_next.reshape(B, hid, H, W))


def ref_forward(x, h, c, weight_oihw, bias):
    """Pure-JAX reference matching the PyTorch module (NCHW, f32)."""
    comb = jnp.concatenate([x, h], axis=1)
    out = jax.lax.conv_general_dilated(
        comb, weight_oihw, window_strides=(1, 1), padding="SAME",
        dimension_numbers=("NCHW", "OIHW", "NCHW"))
    out = out + bias[None, :, None, None]
    cc_i, cc_f, cc_o, cc_g = jnp.split(out, 4, axis=1)
    i = jax.nn.sigmoid(cc_i)
    f = jax.nn.sigmoid(cc_f)
    o = jax.nn.sigmoid(cc_o)
    g = jnp.tanh(cc_g)
    c_next = f * c + i * g
    h_next = o * jnp.tanh(c_next)
    return h_next, c_next


if __name__ == "__main__":
    B, input_dim, hidden_dim = 2, 4, 32
    H = W = 16
    kernel_size = (3, 3)

    key = jax.random.PRNGKey(0)
    kx, kh, kc, kw_, kb = jax.random.split(key, 5)

    x = jax.random.normal(kx, (B, input_dim, H, W), jnp.float32)
    h_cur = jax.random.normal(kh, (B, hidden_dim, H, W), jnp.float32)
    c_cur = jax.random.normal(kc, (B, hidden_dim, H, W), jnp.float32)

    # Conv2d-style params: weight (4*hid, in+hid, KH, KW), bias (4*hid,).
    cin = input_dim + hidden_dim
    fan_in = cin * kernel_size[0] * kernel_size[1]
    bound = 1.0 / np.sqrt(fan_in)
    weight = jax.random.uniform(kw_, (4 * hidden_dim, cin, *kernel_size),
                                jnp.float32, -bound, bound)
    bias = jax.random.uniform(kb, (4 * hidden_dim,), jnp.float32,
                              -bound, bound)

    h_ref, c_ref_out = ref_forward(x, h_cur, c_cur, weight, bias)

    # Performance path: bf16 MXU operands, f32 accumulation + f32 gating.
    h_bf, c_bf = convlstm_cell_forward(x, h_cur, c_cur, weight, bias,
                                       kernel_size,
                                       compute_dtype=jnp.bfloat16)
    jax.block_until_ready((h_bf, c_bf))
    np.testing.assert_allclose(np.asarray(h_bf), np.asarray(h_ref),
                               rtol=3e-2, atol=3e-2)
    np.testing.assert_allclose(np.asarray(c_bf), np.asarray(c_ref_out),
                               rtol=3e-2, atol=3e-2)

    # Full-f32 path: tight check against the XLA reference.
    h_f32, c_f32 = convlstm_cell_forward(x, h_cur, c_cur, weight, bias,
                                         kernel_size,
                                         compute_dtype=jnp.float32)
    jax.block_until_ready((h_f32, c_f32))
    np.testing.assert_allclose(np.asarray(h_f32), np.asarray(h_ref),
                               rtol=1e-4, atol=1e-4)
    np.testing.assert_allclose(np.asarray(c_f32), np.asarray(c_ref_out),
                               rtol=1e-4, atol=1e-4)

    print("KERNEL_OK")
</pallas_src>

<mosaic_0001>
module attributes {stable_mosaic.version = 11 : i64} {
  func.func @convlstm_cell_kernel(%arg0: i32, %arg1: memref<1x4x256xf32, #tpu.memory_space<vmem>>, %arg2: memref<1x32x256xf32, #tpu.memory_space<vmem>>, %arg3: memref<1x32x256xf32, #tpu.memory_space<vmem>>, %arg4: memref<128x324xbf16, #tpu.memory_space<vmem>>, %arg5: memref<128x1xf32, #tpu.memory_space<vmem>>, %arg6: memref<1x32x256xf32, #tpu.memory_space<vmem>>, %arg7: memref<1x32x256xf32, #tpu.memory_space<vmem>>, %arg8: memref<324x256xbf16, #tpu.memory_space<vmem>>) attributes {dimension_semantics = [#tpu.dimension_semantics<parallel>], iteration_bounds = array<i64: 2>, scalar_prefetch = 0 : i64, scratch_operands = 1 : i64, tpu.core_type = #tpu.core_type<tc>, window_params = [{transform_indices = @transform_0, window_bounds = array<i64: 1, 4, 256>}, {transform_indices = @transform_1, window_bounds = array<i64: 1, 32, 256>}, {transform_indices = @transform_2, window_bounds = array<i64: 1, 32, 256>}, {pipeline_mode = #tpu.pipeline_mode<synchronous>, transform_indices = @transform_3, window_bounds = array<i64: 128, 324>}, {pipeline_mode = #tpu.pipeline_mode<synchronous>, transform_indices = @transform_4, window_bounds = array<i64: 128, 1>}, {transform_indices = @transform_5, window_bounds = array<i64: 1, 32, 256>}, {transform_indices = @transform_6, window_bounds = array<i64: 1, 32, 256>}]} {
    %cst = arith.constant 0.000000e+00 : bf16
    %0 = vector.broadcast %cst : bf16 to vector<324x256xbf16>
    %c0 = arith.constant 0 : index
    %c0_0 = arith.constant 0 : index
    %1 = vector.load %arg8[%c0, %c0_0] : memref<324x256xbf16, #tpu.memory_space<vmem>>, vector<324x256xbf16>
    tpu.vector_store %arg8[%c0, %c0_0], %0 {strides = array<i32>} : memref<324x256xbf16, #tpu.memory_space<vmem>>, vector<324x256xbf16>,
    %c0_1 = arith.constant 0 : index
    %c0_2 = arith.constant 0 : index
    %c0_3 = arith.constant 0 : index
    %2 = vector.load %arg1[%c0_1, %c0_2, %c0_3] : memref<1x4x256xf32, #tpu.memory_space<vmem>>, vector<1x4x256xf32>
    %3 = vector.shape_cast %2 : vector<1x4x256xf32> to vector<4x256xf32>
    %4 = arith.truncf %3 : vector<4x256xf32> to vector<4x256xbf16>
    %c0_4 = arith.constant 0 : index
    %c0_5 = arith.constant 0 : index
    %c0_6 = arith.constant 0 : index
    %5 = vector.load %arg2[%c0_4, %c0_5, %c0_6] : memref<1x32x256xf32, #tpu.memory_space<vmem>>, vector<1x32x256xf32>
    %6 = vector.shape_cast %5 : vector<1x32x256xf32> to vector<32x256xf32>
    %7 = arith.truncf %6 : vector<32x256xf32> to vector<32x256xbf16>
    %8 = tpu.iota {dimensions = array<i32: 1>} : vector<1x256xi32>
    %c16_i32 = arith.constant 16 : i32
    %c0_i32 = arith.constant 0 : i32
    %9 = arith.cmpi eq, %c16_i32, %c0_i32 : i32
    %c1_i32 = arith.constant 1 : i32
    %10 = arith.select %9, %c1_i32, %c16_i32 : i32
    %11 = vector.broadcast %10 : i32 to vector<1x256xi32>
    %12 = arith.remsi %8, %11 : vector<1x256xi32>
    %c0_i32_7 = arith.constant 0 : i32
    %13 = vector.broadcast %c0_i32_7 : i32 to vector<1x256xi32>
    %14 = arith.cmpi ne, %12, %13 : vector<1x256xi32>
    %c0_i32_8 = arith.constant 0 : i32
    %15 = vector.broadcast %c0_i32_8 : i32 to vector<1x256xi32>
    %16 = arith.cmpi slt, %12, %15 : vector<1x256xi32>
    %c0_i32_9 = arith.constant 0 : i32
    %17 = arith.cmpi slt, %10, %c0_i32_9 : i32
    %18 = vector.broadcast %17 : i1 to vector<1x256xi1>
    %19 = vector.broadcast %18 : vector<1x256xi1> to vector<1x256xi1>
    %20 = arith.xori %16, %19 : vector<1x256xi1>
    %21 = arith.andi %20, %14 : vector<1x256xi1>
    %22 = vector.broadcast %10 : i32 to vector<1x256xi32>
    %23 = arith.addi %12, %22 : vector<1x256xi32>
    %24 = arith.select %21, %23, %12 : vector<1x256xi1>, vector<1x256xi32>
    %c-1_i32 = arith.constant -1 : i32
    %25 = vector.broadcast %c-1_i32 : i32 to vector<1x256xi32>
    %26 = arith.addi %24, %25 : vector<1x256xi32>
    %c0_i32_10 = arith.constant 0 : i32
    %27 = vector.broadcast %c0_i32_10 : i32 to vector<1x256xi32>
    %28 = arith.cmpi sge, %26, %27 : vector<1x256xi32>
    %c-1_i32_11 = arith.constant -1 : i32
    %29 = vector.broadcast %c-1_i32_11 : i32 to vector<1x256xi32>
    %30 = arith.addi %24, %29 : vector<1x256xi32>
    %c16_i32_12 = arith.constant 16 : i32
    %31 = vector.broadcast %c16_i32_12 : i32 to vector<1x256xi32>
    %32 = arith.cmpi slt, %30, %31 : vector<1x256xi32>
    %33 = arith.andi %28, %32 : vector<1x256xi1>
    %c0_i32_13 = arith.constant 0 : i32
    %34 = vector.broadcast %c0_i32_13 : i32 to vector<1x256xi32>
    %35 = arith.addi %24, %34 : vector<1x256xi32>
    %c0_i32_14 = arith.constant 0 : i32
    %36 = vector.broadcast %c0_i32_14 : i32 to vector<1x256xi32>
    %37 = arith.cmpi sge, %35, %36 : vector<1x256xi32>
    %c0_i32_15 = arith.constant 0 : i32
    %38 = vector.broadcast %c0_i32_15 : i32 to vector<1x256xi32>
    %39 = arith.addi %24, %38 : vector<1x256xi32>
    %c16_i32_16 = arith.constant 16 : i32
    %40 = vector.broadcast %c16_i32_16 : i32 to vector<1x256xi32>
    %41 = arith.cmpi slt, %39, %40 : vector<1x256xi32>
    %42 = arith.andi %37, %41 : vector<1x256xi1>
    %c1_i32_17 = arith.constant 1 : i32
    %43 = vector.broadcast %c1_i32_17 : i32 to vector<1x256xi32>
    %44 = arith.addi %24, %43 : vector<1x256xi32>
    %c0_i32_18 = arith.constant 0 : i32
    %45 = vector.broadcast %c0_i32_18 : i32 to vector<1x256xi32>
    %46 = arith.cmpi sge, %44, %45 : vector<1x256xi32>
    %c1_i32_19 = arith.constant 1 : i32
    %47 = vector.broadcast %c1_i32_19 : i32 to vector<1x256xi32>
    %48 = arith.addi %24, %47 : vector<1x256xi32>
    %c16_i32_20 = arith.constant 16 : i32
    %49 = vector.broadcast %c16_i32_20 : i32 to vector<1x256xi32>
    %50 = arith.cmpi slt, %48, %49 : vector<1x256xi32>
    %51 = arith.andi %46, %50 : vector<1x256xi1>
    %52 = vector.extract_strided_slice %33 {offsets = [0, 17], sizes = [1, 239], strides = [1, 1]} : vector<1x256xi1> to vector<1x239xi1>
    %53 = vector.extract_strided_slice %4 {offsets = [0, 0], sizes = [4, 239], strides = [1, 1]} : vector<4x256xbf16> to vector<4x239xbf16>
    %c0_i32_21 = arith.constant 0 : i32
    %54 = arith.sitofp %c0_i32_21 : i32 to bf16
    %55 = vector.shape_cast %52 : vector<1x239xi1> to vector<1x239xi1>
    %56 = vector.broadcast %55 : vector<1x239xi1> to vector<4x239xi1>
    %57 = vector.broadcast %54 : bf16 to vector<4x239xbf16>
    %58 = arith.select %56, %53, %57 : vector<4x239xi1>, vector<4x239xbf16>
    %c0_22 = arith.constant 0 : index
    %c17 = arith.constant 17 : index
    %59 = vector.load %arg8[%c0_22, %c17] : memref<324x256xbf16, #tpu.memory_space<vmem>>, vector<4x239xbf16>
    tpu.vector_store %arg8[%c0_22, %c17], %58 {strides = array<i32>} : memref<324x256xbf16, #tpu.memory_space<vmem>>, vector<4x239xbf16>,
    %60 = vector.extract_strided_slice %7 {offsets = [0, 0], sizes = [32, 239], strides = [1, 1]} : vector<32x256xbf16> to vector<32x239xbf16>
    %c0_i32_23 = arith.constant 0 : i32
    %61 = arith.sitofp %c0_i32_23 : i32 to bf16
    %62 = vector.shape_cast %52 : vector<1x239xi1> to vector<1x239xi1>
    %63 = vector.broadcast %62 : vector<1x239xi1> to vector<32x239xi1>
    %64 = vector.broadcast %61 : bf16 to vector<32x239xbf16>
    %65 = arith.select %63, %60, %64 : vector<32x239xi1>, vector<32x239xbf16>
    %c4 = arith.constant 4 : index
    %c17_24 = arith.constant 17 : index
    %66 = vector.load %arg8[%c4, %c17_24] : memref<324x256xbf16, #tpu.memory_space<vmem>>, vector<32x239xbf16>
    tpu.vector_store %arg8[%c4, %c17_24], %65 {strides = array<i32>} : memref<324x256xbf16, #tpu.memory_space<vmem>>, vector<32x239xbf16>,
    %67 = vector.extract_strided_slice %42 {offsets = [0, 16], sizes = [1, 240], strides = [1, 1]} : vector<1x256xi1> to vector<1x240xi1>
    %68 = vector.extract_strided_slice %4 {offsets = [0, 0], sizes = [4, 240], strides = [1, 1]} : vector<4x256xbf16> to vector<4x240xbf16>
    %c0_i32_25 = arith.constant 0 : i32
    %69 = arith.sitofp %c0_i32_25 : i32 to bf16
    %70 = vector.shape_cast %67 : vector<1x240xi1> to vector<1x240xi1>
    %71 = vector.broadcast %70 : vector<1x240xi1> to vector<4x240xi1>
    %72 = vector.broadcast %69 : bf16 to vector<4x240xbf16>
    %73 = arith.select %71, %68, %72 : vector<4x240xi1>, vector<4x240xbf16>
    %c36 = arith.constant 36 : index
    %c16 = arith.constant 16 : index
    %74 = vector.load %arg8[%c36, %c16] : memref<324x256xbf16, #tpu.memory_space<vmem>>, vector<4x240xbf16>
    tpu.vector_store %arg8[%c36, %c16], %73 {strides = array<i32>} : memref<324x256xbf16, #tpu.memory_space<vmem>>, vector<4x240xbf16>,
    %75 = vector.extract_strided_slice %7 {offsets = [0, 0], sizes = [32, 240], strides = [1, 1]} : vector<32x256xbf16> to vector<32x240xbf16>
    %c0_i32_26 = arith.constant 0 : i32
    %76 = arith.sitofp %c0_i32_26 : i32 to bf16
    %77 = vector.shape_cast %67 : vector<1x240xi1> to vector<1x240xi1>
    %78 = vector.broadcast %77 : vector<1x240xi1> to vector<32x240xi1>
    %79 = vector.broadcast %76 : bf16 to vector<32x240xbf16>
    %80 = arith.select %78, %75, %79 : vector<32x240xi1>, vector<32x240xbf16>
    %c40 = arith.constant 40 : index
    %c16_27 = arith.constant 16 : index
    %81 = vector.load %arg8[%c40, %c16_27] : memref<324x256xbf16, #tpu.memory_space<vmem>>, vector<32x240xbf16>
    tpu.vector_store %arg8[%c40, %c16_27], %80 {strides = array<i32>} : memref<324x256xbf16, #tpu.memory_space<vmem>>, vector<32x240xbf16>,
    %82 = vector.extract_strided_slice %51 {offsets = [0, 15], sizes = [1, 241], strides = [1, 1]} : vector<1x256xi1> to vector<1x241xi1>
    %83 = vector.extract_strided_slice %4 {offsets = [0, 0], sizes = [4, 241], strides = [1, 1]} : vector<4x256xbf16> to vector<4x241xbf16>
    %c0_i32_28 = arith.constant 0 : i32
    %84 = arith.sitofp %c0_i32_28 : i32 to bf16
    %85 = vector.shape_cast %82 : vector<1x241xi1> to vector<1x241xi1>
    %86 = vector.broadcast %85 : vector<1x241xi1> to vector<4x241xi1>
    %87 = vector.broadcast %84 : bf16 to vector<4x241xbf16>
    %88 = arith.select %86, %83, %87 : vector<4x241xi1>, vector<4x241xbf16>
    %c72 = arith.constant 72 : index
    %c15 = arith.constant 15 : index
    %89 = vector.load %arg8[%c72, %c15] : memref<324x256xbf16, #tpu.memory_space<vmem>>, vector<4x241xbf16>
    tpu.vector_store %arg8[%c72, %c15], %88 {strides = array<i32>} : memref<324x256xbf16, #tpu.memory_space<vmem>>, vector<4x241xbf16>,
    %90 = vector.extract_strided_slice %7 {offsets = [0, 0], sizes = [32, 241], strides = [1, 1]} : vector<32x256xbf16> to vector<32x241xbf16>
    %c0_i32_29 = arith.constant 0 : i32
    %91 = arith.sitofp %c0_i32_29 : i32 to bf16
    %92 = vector.shape_cast %82 : vector<1x241xi1> to vector<1x241xi1>
    %93 = vector.broadcast %92 : vector<1x241xi1> to vector<32x241xi1>
    %94 = vector.broadcast %91 : bf16 to vector<32x241xbf16>
    %95 = arith.select %93, %90, %94 : vector<32x241xi1>, vector<32x241xbf16>
    %c76 = arith.constant 76 : index
    %c15_30 = arith.constant 15 : index
    %96 = vector.load %arg8[%c76, %c15_30] : memref<324x256xbf16, #tpu.memory_space<vmem>>, vector<32x241xbf16>
    tpu.vector_store %arg8[%c76, %c15_30], %95 {strides = array<i32>} : memref<324x256xbf16, #tpu.memory_space<vmem>>, vector<32x241xbf16>,
    %97 = vector.extract_strided_slice %33 {offsets = [0, 1], sizes = [1, 255], strides = [1, 1]} : vector<1x256xi1> to vector<1x255xi1>
    %98 = vector.extract_strided_slice %4 {offsets = [0, 0], sizes = [4, 255], strides = [1, 1]} : vector<4x256xbf16> to vector<4x255xbf16>
    %c0_i32_31 = arith.constant 0 : i32
    %99 = arith.sitofp %c0_i32_31 : i32 to bf16
    %100 = vector.shape_cast %97 : vector<1x255xi1> to vector<1x255xi1>
    %101 = vector.broadcast %100 : vector<1x255xi1> to vector<4x255xi1>
    %102 = vector.broadcast %99 : bf16 to vector<4x255xbf16>
    %103 = arith.select %101, %98, %102 : vector<4x255xi1>, vector<4x255xbf16>
    %c108 = arith.constant 108 : index
    %c1 = arith.constant 1 : index
    %104 = vector.load %arg8[%c108, %c1] : memref<324x256xbf16, #tpu.memory_space<vmem>>, vector<4x255xbf16>
    tpu.vector_store %arg8[%c108, %c1], %103 {strides = array<i32>} : memref<324x256xbf16, #tpu.memory_space<vmem>>, vector<4x255xbf16>,
    %105 = vector.extract_strided_slice %7 {offsets = [0, 0], sizes = [32, 255], strides = [1, 1]} : vector<32x256xbf16> to vector<32x255xbf16>
    %c0_i32_32 = arith.constant 0 : i32
    %106 = arith.sitofp %c0_i32_32 : i32 to bf16
    %107 = vector.shape_cast %97 : vector<1x255xi1> to vector<1x255xi1>
    %108 = vector.broadcast %107 : vector<1x255xi1> to vector<32x255xi1>
    %109 = vector.broadcast %106 : bf16 to vector<32x255xbf16>
    %110 = arith.select %108, %105, %109 : vector<32x255xi1>, vector<32x255xbf16>
    %c112 = arith.constant 112 : index
    %c1_33 = arith.constant 1 : index
    %111 = vector.load %arg8[%c112, %c1_33] : memref<324x256xbf16, #tpu.memory_space<vmem>>, vector<32x255xbf16>
    tpu.vector_store %arg8[%c112, %c1_33], %110 {strides = array<i32>} : memref<324x256xbf16, #tpu.memory_space<vmem>>, vector<32x255xbf16>,
    %c0_i32_34 = arith.constant 0 : i32
    %112 = arith.sitofp %c0_i32_34 : i32 to bf16
    %113 = vector.shape_cast %42 : vector<1x256xi1> to vector<1x256xi1>
    %114 = vector.broadcast %113 : vector<1x256xi1> to vector<4x256xi1>
    %115 = vector.broadcast %112 : bf16 to vector<4x256xbf16>
    %116 = arith.select %114, %4, %115 : vector<4x256xi1>, vector<4x256xbf16>
    %c144 = arith.constant 144 : index
    %c0_35 = arith.constant 0 : index
    %117 = vector.load %arg8[%c144, %c0_35] : memref<324x256xbf16, #tpu.memory_space<vmem>>, vector<4x256xbf16>
    tpu.vector_store %arg8[%c144, %c0_35], %116 {strides = array<i32>} : memref<324x256xbf16, #tpu.memory_space<vmem>>, vector<4x256xbf16>,
    %c0_i32_36 = arith.constant 0 : i32
    %118 = arith.sitofp %c0_i32_36 : i32 to bf16
    %119 = vector.shape_cast %42 : vector<1x256xi1> to vector<1x256xi1>
    %120 = vector.broadcast %119 : vector<1x256xi1> to vector<32x256xi1>
    %121 = vector.broadcast %118 : bf16 to vector<32x256xbf16>
    %122 = arith.select %120, %7, %121 : vector<32x256xi1>, vector<32x256xbf16>
    %c148 = arith.constant 148 : index
    %c0_37 = arith.constant 0 : index
    %123 = vector.load %arg8[%c148, %c0_37] : memref<324x256xbf16, #tpu.memory_space<vmem>>, vector<32x256xbf16>
    tpu.vector_store %arg8[%c148, %c0_37], %122 {strides = array<i32>} : memref<324x256xbf16, #tpu.memory_space<vmem>>, vector<32x256xbf16>,
    %124 = vector.extract_strided_slice %51 {offsets = [0, 0], sizes = [1, 255], strides = [1, 1]} : vector<1x256xi1> to vector<1x255xi1>
    %125 = vector.extract_strided_slice %4 {offsets = [0, 1], sizes = [4, 255], strides = [1, 1]} : vector<4x256xbf16> to vector<4x255xbf16>
    %c0_i32_38 = arith.constant 0 : i32
    %126 = arith.sitofp %c0_i32_38 : i32 to bf16
    %127 = vector.shape_cast %124 : vector<1x255xi1> to vector<1x255xi1>
    %128 = vector.broadcast %127 : vector<1x255xi1> to vector<4x255xi1>
    %129 = vector.broadcast %126 : bf16 to vector<4x255xbf16>
    %130 = arith.select %128, %125, %129 : vector<4x255xi1>, vector<4x255xbf16>
    %c180 = arith.constant 180 : index
    %c0_39 = arith.constant 0 : index
    %131 = vector.load %arg8[%c180, %c0_39] : memref<324x256xbf16, #tpu.memory_space<vmem>>, vector<4x255xbf16>
    tpu.vector_store %arg8[%c180, %c0_39], %130 {strides = array<i32>} : memref<324x256xbf16, #tpu.memory_space<vmem>>, vector<4x255xbf16>,
    %132 = vector.extract_strided_slice %7 {offsets = [0, 1], sizes = [32, 255], strides = [1, 1]} : vector<32x256xbf16> to vector<32x255xbf16>
    %c0_i32_40 = arith.constant 0 : i32
    %133 = arith.sitofp %c0_i32_40 : i32 to bf16
    %134 = vector.shape_cast %124 : vector<1x255xi1> to vector<1x255xi1>
    %135 = vector.broadcast %134 : vector<1x255xi1> to vector<32x255xi1>
    %136 = vector.broadcast %133 : bf16 to vector<32x255xbf16>
    %137 = arith.select %135, %132, %136 : vector<32x255xi1>, vector<32x255xbf16>
    %c184 = arith.constant 184 : index
    %c0_41 = arith.constant 0 : index
    %138 = vector.load %arg8[%c184, %c0_41] : memref<324x256xbf16, #tpu.memory_space<vmem>>, vector<32x255xbf16>
    tpu.vector_store %arg8[%c184, %c0_41], %137 {strides = array<i32>} : memref<324x256xbf16, #tpu.memory_space<vmem>>, vector<32x255xbf16>,
    %139 = vector.extract_strided_slice %33 {offsets = [0, 0], sizes = [1, 241], strides = [1, 1]} : vector<1x256xi1> to vector<1x241xi1>
    %140 = vector.extract_strided_slice %4 {offsets = [0, 15], sizes = [4, 241], strides = [1, 1]} : vector<4x256xbf16> to vector<4x241xbf16>
    %c0_i32_42 = arith.constant 0 : i32
    %141 = arith.sitofp %c0_i32_42 : i32 to bf16
    %142 = vector.shape_cast %139 : vector<1x241xi1> to vector<1x241xi1>
    %143 = vector.broadcast %142 : vector<1x241xi1> to vector<4x241xi1>
    %144 = vector.broadcast %141 : bf16 to vector<4x241xbf16>
    %145 = arith.select %143, %140, %144 : vector<4x241xi1>, vector<4x241xbf16>
    %c216 = arith.constant 216 : index
    %c0_43 = arith.constant 0 : index
    %146 = vector.load %arg8[%c216, %c0_43] : memref<324x256xbf16, #tpu.memory_space<vmem>>, vector<4x241xbf16>
    tpu.vector_store %arg8[%c216, %c0_43], %145 {strides = array<i32>} : memref<324x256xbf16, #tpu.memory_space<vmem>>, vector<4x241xbf16>,
    %147 = vector.extract_strided_slice %7 {offsets = [0, 15], sizes = [32, 241], strides = [1, 1]} : vector<32x256xbf16> to vector<32x241xbf16>
    %c0_i32_44 = arith.constant 0 : i32
    %148 = arith.sitofp %c0_i32_44 : i32 to bf16
    %149 = vector.shape_cast %139 : vector<1x241xi1> to vector<1x241xi1>
    %150 = vector.broadcast %149 : vector<1x241xi1> to vector<32x241xi1>
    %151 = vector.broadcast %148 : bf16 to vector<32x241xbf16>
    %152 = arith.select %150, %147, %151 : vector<32x241xi1>, vector<32x241xbf16>
    %c220 = arith.constant 220 : index
    %c0_45 = arith.constant 0 : index
    %153 = vector.load %arg8[%c220, %c0_45] : memref<324x256xbf16, #tpu.memory_space<vmem>>, vector<32x241xbf16>
    tpu.vector_store %arg8[%c220, %c0_45], %152 {strides = array<i32>} : memref<324x256xbf16, #tpu.memory_space<vmem>>, vector<32x241xbf16>,
    %154 = vector.extract_strided_slice %42 {offsets = [0, 0], sizes = [1, 240], strides = [1, 1]} : vector<1x256xi1> to vector<1x240xi1>
    %155 = vector.extract_strided_slice %4 {offsets = [0, 16], sizes = [4, 240], strides = [1, 1]} : vector<4x256xbf16> to vector<4x240xbf16>
    %c0_i32_46 = arith.constant 0 : i32
    %156 = arith.sitofp %c0_i32_46 : i32 to bf16
    %157 = vector.shape_cast %154 : vector<1x240xi1> to vector<1x240xi1>
    %158 = vector.broadcast %157 : vector<1x240xi1> to vector<4x240xi1>
    %159 = vector.broadcast %156 : bf16 to vector<4x240xbf16>
    %160 = arith.select %158, %155, %159 : vector<4x240xi1>, vector<4x240xbf16>
    %c252 = arith.constant 252 : index
    %c0_47 = arith.constant 0 : index
    %161 = vector.load %arg8[%c252, %c0_47] : memref<324x256xbf16, #tpu.memory_space<vmem>>, vector<4x240xbf16>
    tpu.vector_store %arg8[%c252, %c0_47], %160 {strides = array<i32>} : memref<324x256xbf16, #tpu.memory_space<vmem>>, vector<4x240xbf16>,
    %162 = vector.extract_strided_slice %7 {offsets = [0, 16], sizes = [32, 240], strides = [1, 1]} : vector<32x256xbf16> to vector<32x240xbf16>
    %c0_i32_48 = arith.constant 0 : i32
    %163 = arith.sitofp %c0_i32_48 : i32 to bf16
    %164 = vector.shape_cast %154 : vector<1x240xi1> to vector<1x240xi1>
    %165 = vector.broadcast %164 : vector<1x240xi1> to vector<32x240xi1>
    %166 = vector.broadcast %163 : bf16 to vector<32x240xbf16>
    %167 = arith.select %165, %162, %166 : vector<32x240xi1>, vector<32x240xbf16>
    %c256 = arith.constant 256 : index
    %c0_49 = arith.constant 0 : index
    %168 = vector.load %arg8[%c256, %c0_49] : memref<324x256xbf16, #tpu.memory_space<vmem>>, vector<32x240xbf16>
    tpu.vector_store %arg8[%c256, %c0_49], %167 {strides = array<i32>} : memref<324x256xbf16, #tpu.memory_space<vmem>>, vector<32x240xbf16>,
    %169 = vector.extract_strided_slice %51 {offsets = [0, 0], sizes = [1, 239], strides = [1, 1]} : vector<1x256xi1> to vector<1x239xi1>
    %170 = vector.extract_strided_slice %4 {offsets = [0, 17], sizes = [4, 239], strides = [1, 1]} : vector<4x256xbf16> to vector<4x239xbf16>
    %c0_i32_50 = arith.constant 0 : i32
    %171 = arith.sitofp %c0_i32_50 : i32 to bf16
    %172 = vector.shape_cast %169 : vector<1x239xi1> to vector<1x239xi1>
    %173 = vector.broadcast %172 : vector<1x239xi1> to vector<4x239xi1>
    %174 = vector.broadcast %171 : bf16 to vector<4x239xbf16>
    %175 = arith.select %173, %170, %174 : vector<4x239xi1>, vector<4x239xbf16>
    %c288 = arith.constant 288 : index
    %c0_51 = arith.constant 0 : index
    %176 = vector.load %arg8[%c288, %c0_51] : memref<324x256xbf16, #tpu.memory_space<vmem>>, vector<4x239xbf16>
    tpu.vector_store %arg8[%c288, %c0_51], %175 {strides = array<i32>} : memref<324x256xbf16, #tpu.memory_space<vmem>>, vector<4x239xbf16>,
    %177 = vector.extract_strided_slice %7 {offsets = [0, 17], sizes = [32, 239], strides = [1, 1]} : vector<32x256xbf16> to vector<32x239xbf16>
    %c0_i32_52 = arith.constant 0 : i32
    %178 = arith.sitofp %c0_i32_52 : i32 to bf16
    %179 = vector.shape_cast %169 : vector<1x239xi1> to vector<1x239xi1>
    %180 = vector.broadcast %179 : vector<1x239xi1> to vector<32x239xi1>
    %181 = vector.broadcast %178 : bf16 to vector<32x239xbf16>
    %182 = arith.select %180, %177, %181 : vector<32x239xi1>, vector<32x239xbf16>
    %c292 = arith.constant 292 : index
    %c0_53 = arith.constant 0 : index
    %183 = vector.load %arg8[%c292, %c0_53] : memref<324x256xbf16, #tpu.memory_space<vmem>>, vector<32x239xbf16>
    tpu.vector_store %arg8[%c292, %c0_53], %182 {strides = array<i32>} : memref<324x256xbf16, #tpu.memory_space<vmem>>, vector<32x239xbf16>,
    %c0_54 = arith.constant 0 : index
    %c0_55 = arith.constant 0 : index
    %184 = vector.load %arg4[%c0_54, %c0_55] : memref<128x324xbf16, #tpu.memory_space<vmem>>, vector<128x324xbf16>
    %c0_56 = arith.constant 0 : index
    %c0_57 = arith.constant 0 : index
    %185 = vector.load %arg8[%c0_56, %c0_57] : memref<324x256xbf16, #tpu.memory_space<vmem>>, vector<324x256xbf16>
    %cst_58 = arith.constant dense<0.000000e+00> : vector<128x256xf32>
    %186 = tpu.matmul %184, %185, %cst_58 {dimension_numbers = #tpu.dot_dimension_numbers<[1], [0], [0], [1], [0, 0, 1, 1], [], []>} : vector<128x324xbf16>, vector<324x256xbf16>, vector<128x256xf32> -> vector<128x256xf32>
    %c0_59 = arith.constant 0 : index
    %c0_60 = arith.constant 0 : index
    %187 = vector.load %arg5[%c0_59, %c0_60] : memref<128x1xf32, #tpu.memory_space<vmem>>, vector<128x1xf32>
    %188 = vector.broadcast %187 : vector<128x1xf32> to vector<128x256xf32>
    %189 = arith.addf %186, %188 : vector<128x256xf32>
    %190 = vector.extract_strided_slice %189 {offsets = [0, 0], sizes = [32, 256], strides = [1, 1]} : vector<128x256xf32> to vector<32x256xf32>
    %191 = arith.negf %190 : vector<32x256xf32>
    %192 = math.exp %191 : vector<32x256xf32>
    %cst_61 = arith.constant 1.000000e+00 : f32
    %193 = vector.broadcast %cst_61 : f32 to vector<32x256xf32>
    %194 = arith.addf %193, %192 : vector<32x256xf32>
    %195 = arith.divf %193, %194 : vector<32x256xf32>
    %196 = vector.extract_strided_slice %189 {offsets = [32, 0], sizes = [32, 256], strides = [1, 1]} : vector<128x256xf32> to vector<32x256xf32>
    %197 = arith.negf %196 : vector<32x256xf32>
    %198 = math.exp %197 : vector<32x256xf32>
    %cst_62 = arith.constant 1.000000e+00 : f32
    %199 = vector.broadcast %cst_62 : f32 to vector<32x256xf32>
    %200 = arith.addf %199, %198 : vector<32x256xf32>
    %201 = arith.divf %199, %200 : vector<32x256xf32>
    %202 = vector.extract_strided_slice %189 {offsets = [64, 0], sizes = [32, 256], strides = [1, 1]} : vector<128x256xf32> to vector<32x256xf32>
    %203 = arith.negf %202 : vector<32x256xf32>
    %204 = math.exp %203 : vector<32x256xf32>
    %cst_63 = arith.constant 1.000000e+00 : f32
    %205 = vector.broadcast %cst_63 : f32 to vector<32x256xf32>
    %206 = arith.addf %205, %204 : vector<32x256xf32>
    %207 = arith.divf %205, %206 : vector<32x256xf32>
    %208 = vector.extract_strided_slice %189 {offsets = [96, 0], sizes = [32, 256], strides = [1, 1]} : vector<128x256xf32> to vector<32x256xf32>
    %209 = math.tanh %208 : vector<32x256xf32>
    %c0_64 = arith.constant 0 : index
    %c0_65 = arith.constant 0 : index
    %c0_66 = arith.constant 0 : index
    %210 = vector.load %arg3[%c0_64, %c0_65, %c0_66] : memref<1x32x256xf32, #tpu.memory_space<vmem>>, vector<1x32x256xf32>
    %211 = vector.shape_cast %210 : vector<1x32x256xf32> to vector<32x256xf32>
    %212 = arith.mulf %201, %211 : vector<32x256xf32>
    %213 = arith.mulf %195, %209 : vector<32x256xf32>
    %214 = arith.addf %212, %213 : vector<32x256xf32>
    %215 = math.tanh %214 : vector<32x256xf32>
    %216 = arith.mulf %207, %215 : vector<32x256xf32>
    %c0_67 = arith.constant 0 : index
    %c0_68 = arith.constant 0 : index
    %c0_69 = arith.constant 0 : index
    %217 = vector.load %arg7[%c0_67, %c0_68, %c0_69] : memref<1x32x256xf32, #tpu.memory_space<vmem>>, vector<1x32x256xf32>
    %218 = vector.shape_cast %217 : vector<1x32x256xf32> to vector<32x256xf32>
    %219 = vector.shape_cast %214 : vector<32x256xf32> to vector<1x32x256xf32>
    tpu.vector_store %arg7[%c0_67, %c0_68, %c0_69], %219 {strides = array<i32>} : memref<1x32x256xf32, #tpu.memory_space<vmem>>, vector<1x32x256xf32>,
    %c0_70 = arith.constant 0 : index
    %c0_71 = arith.constant 0 : index
    %c0_72 = arith.constant 0 : index
    %220 = vector.load %arg6[%c0_70, %c0_71, %c0_72] : memref<1x32x256xf32, #tpu.memory_space<vmem>>, vector<1x32x256xf32>
    %221 = vector.shape_cast %220 : vector<1x32x256xf32> to vector<32x256xf32>
    %222 = vector.shape_cast %216 : vector<32x256xf32> to vector<1x32x256xf32>
    tpu.vector_store %arg6[%c0_70, %c0_71, %c0_72], %222 {strides = array<i32>} : memref<1x32x256xf32, #tpu.memory_space<vmem>>, vector<1x32x256xf32>,
    return
  }
  func.func @transform_0(%arg0: i32) -> (i32, i32, i32) {
    %c0_i32 = arith.constant 0 : i32
    %c0_i32_0 = arith.constant 0 : i32
    %c0_i32_1 = arith.constant 0 : i32
    return %arg0, %c0_i32, %c0_i32_0 : i32, i32, i32
  }
  func.func @transform_1(%arg0: i32) -> (i32, i32, i32) {
    %c0_i32 = arith.constant 0 : i32
    %c0_i32_0 = arith.constant 0 : i32
    %c0_i32_1 = arith.constant 0 : i32
    return %arg0, %c0_i32, %c0_i32_0 : i32, i32, i32
  }
  func.func @transform_2(%arg0: i32) -> (i32, i32, i32) {
    %c0_i32 = arith.constant 0 : i32
    %c0_i32_0 = arith.constant 0 : i32
    %c0_i32_1 = arith.constant 0 : i32
    return %arg0, %c0_i32, %c0_i32_0 : i32, i32, i32
  }
  func.func @transform_3(%arg0: i32) -> (i32, i32) {
    %c0_i32 = arith.constant 0 : i32
    %c0_i32_0 = arith.constant 0 : i32
    %c0_i32_1 = arith.constant 0 : i32
    return %c0_i32, %c0_i32_0 : i32, i32
  }
  func.func @transform_4(%arg0: i32) -> (i32, i32) {
    %c0_i32 = arith.constant 0 : i32
    %c0_i32_0 = arith.constant 0 : i32
    %c0_i32_1 = arith.constant 0 : i32
    return %c0_i32, %c0_i32_0 : i32, i32
  }
  func.func @transform_5(%arg0: i32) -> (i32, i32, i32) {
    %c0_i32 = arith.constant 0 : i32
    %c0_i32_0 = arith.constant 0 : i32
    %c0_i32_1 = arith.constant 0 : i32
    return %arg0, %c0_i32, %c0_i32_0 : i32, i32, i32
  }
  func.func @transform_6(%arg0: i32) -> (i32, i32, i32) {
    %c0_i32 = arith.constant 0 : i32
    %c0_i32_0 = arith.constant 0 : i32
    %c0_i32_1 = arith.constant 0 : i32
    return %arg0, %c0_i32, %c0_i32_0 : i32, i32, i32
  }
}

</mosaic_0001>

<bundles_post_ra>
// kernel: tpu_custom_call.1
= control target key start
LH: loop header
LB: loop body
LE: loop exit
PB: predicated region body
PF: predicated region fallthrough
CT: control target
= control target key end

     0   :  { %12 = vsyncpa [#allocation4], 0  ;;  %s3793_s0 = inlined_call_operand.vmem [shape: f32[2,4,256], index: 0, kind: input, shape index: {}]   ;;  %s3794_s1 = inlined_call_operand.vmem [shape: f32[2,32,256], index: 1, kind: input, shape index: {}]   ;;  %s3795_s2 = inlined_call_operand.vmem [shape: f32[2,32,256], index: 2, kind: input, shape index: {}]   ;;  %s3796_s3 = inlined_call_operand.vmem [shape: bf16[128,324], index: 3, kind: input, shape index: {}]   ;;  %s3797_s4 = inlined_call_operand.vmem [shape: f32[128,1], index: 4, kind: input, shape index: {}]   ;;  %s3798_s5 = inlined_call_operand.hbm [shape: f32[2,32,256], index: 5, kind: output, shape index: {0}]   ;;  %s3799_s6 = inlined_call_operand.hbm [shape: f32[2,32,256], index: 6, kind: output, shape index: {1}]  }
   0x1   :  { %14 = vsyncpa [#allocation4 + $0x1], 0 }
   0x2   :  { %15 = vsyncpa [#allocation6], 0 }
   0x3   :  { %17 = vsyncpa [#allocation6 + $0x1], 0  ;;  %s2847_s21 = smov 0   ;;  %s2849_s22 = smov 0  }
   0x4   :  { %s2851_s23 = smov 0   ;;  %s2853_s24 = smov 0  }
   0x5 LB: > { %s2868_s25 = sadd.s32 4294967295, %s2797_s24   ;;  %s2267_s26 = sadd.s32 4294967294, %s2797_s24   ;;  %s2797_s24 = sphi %s2853_s24, %s3854_s24   ;;  %s2793_s23 = sphi %s2851_s23, %s3853_s23   ;;  %s2789_s22 = sphi %s2849_s22, %s3852_s22   ;;  %s2785_s21 = sphi %s2847_s21, %s3851_s21  }
   0x6   : > { %s2872_s27 = sadd.s32 1, %s2797_s24   ;;  %s150_s28 = sadd.s32 1, %s2793_s23 }
   0x7   : > { %s147_s29 = ssub.s32 %s2797_s24, %s2872_s27  ;;  %p160_p0 = scmp.ne.s32.totalorder %s2793_s23, %s2789_s22 }
   0x8   : > { %p148_p1 = scmp.eq.s32.totalorder %s147_s29, 0  ;;  %p161_p2 = scmp.eq.s32.totalorder %s2868_s25, 1 }
   0x9   : > { %p166_p3 = scmp.ne.s32.totalorder %s2789_s22, %s2785_s21  ;;  %p167_p4 = scmp.eq.s32.totalorder %s2267_s26, 1 }
   0xa   : > { %s2883_s30 = scalar_select %p148_p1, %s2793_s23, %s150_s28  }
   0xb   : > { %p2885_p5 = por %p161_p2, %p160_p0  ;;  %p2889_p6 = por %p167_p4, %p166_p3 }
   0xc   : > { %p2270_p7 = scmp.ge.s32.totalorder %s2797_s24, 1  ;;  %p241_p8 = scmp.lt.s32.totalorder %s2797_s24, 3 }
   0xe   : > { %p242_p9 = pnand %p2270_p7, %p241_p8 }
   0xf   : > { %p286_p10 = scmp.lt.s32.totalorder (!%p242_p9), %s2868_s25, 1  ;;  %s2801_s18 = smov (!%p242_p9), 113  }
  0x10   : > { %245 = sbr.rel (%p242_p9) target bundleno = 708 (0x2c4), region = 40  ;;  %s2802_s19 = smov (!%p242_p9), 127  }
  0x11   : > { %s2803_s20 = smov (!%p242_p9), 112   ;;  %s2804_s26 = smov (!%p242_p9), 111  }
  0x12   : > { %s2805_s28 = smov (!%p242_p9), 15   ;;  %s2806_s29 = smov (!%p242_p9), 16  }
  0x13   : > { %s2808_s12 = smov (!%p242_p9), 17   ;;  %s3803_s13 = sshll.u32 (!%p242_p9), %s2868_s25, 10 }
  0x15   : > { %v363_v0 = vlaneseq  ;;  %v2799_v1 = vmov 0   ;;  %vm2800_vm0 = vmmov 1   ;;  %s2939_s9 = scalar_select %p286_p10, %s2868_s25, 1  ;;  %vm448_vm10 = vcmask 1045508   ;;  %v2546_v53 = vld [vmem:[%s3796_s3 + $0x4] ss:$12 sps:$4 sm:$0xff]  }
  0x16   : > { %304 = vst [vmem:[#allocation2] sm:$0xff] %v2799_v1  ;;  %305 = vst [vmem:[#allocation2 + $0x8] sm:$0xff] %v2799_v1  ;;  %1817 = vmatprep.mubr.bf16.mxu1 %v2799_v1  ;;  %2491 = vset.pattern.permute.xlu0 %v2799_v1  ;;  %vm471_vm11 = vcmask 1041408   ;;  %vm539_vm13 = vcmask 916480   ;;  %vm3801_vm14 = vcmask 1039360  }
  0x17   : > { %306 = vst [vmem:[#allocation2 + $0x10] sm:$0xff] %v2799_v1  ;;  %307 = vst [vmem:[#allocation2 + $0x18] sm:$0xff] %v2799_v1  ;;  %v364_v2 = vand.u32 127, %v363_v0  ;;  %v419_v3 = vshrl.u32 %v363_v0, 7  ;;  %2492 = vset.pattern.permute.xlu1 %v2799_v1  ;;  %s2431_s10 = sshll.u32 %s2939_s9, 3  ;;  %s2432_s11 = sshll.u32 %s2939_s9, 6  ;;  %1704 = vmatprep.mubr.bf16.mxu0 %v2546_v53 }
  0x18   : > { %308 = vst [vmem:[#allocation2 + $0x20] sm:$0xff] %v2799_v1  ;;  %309 = vst [vmem:[#allocation2 + $0x28] sm:$0xff] %v2799_v1  ;;  %s290_s14 = scalar_lea.vmem %s3793_s0, %s2431_s10  ;;  %s295_s17 = scalar_lea.vmem %s3794_s1, %s2432_s11 }
  0x19   : > { %310 = vst [vmem:[#allocation2 + $0x30] sm:$0xff] %v2799_v1  ;;  %311 = vst [vmem:[#allocation2 + $0x38] sm:$0xff] %v2799_v1  ;;  %v365_v5 = vadd.s32 128, %v364_v2  ;;  %v370_v6 = vand.u32 15, %v364_v2  ;;  %v420_v7 = vsub.s32 0, %v419_v3  ;;  %v424_v8 = vsub.s32 4, %v419_v3 }
  0x1a   : > { %312 = vst [vmem:[#allocation2 + $0x40] sm:$0xff] %v2799_v1  ;;  %313 = vst [vmem:[#allocation2 + $0x48] sm:$0xff] %v2799_v1  ;;  %v345_v13 = vld [vmem:[%s290_s14] sm:$0xff]  ;;  %v353_v15 = vld [vmem:[%s295_s17 + $0x10] sm:$0xff]  ;;  %s2807_s10 = smov 1  }
  0x1b   : > { %314 = vst [vmem:[#allocation2 + $0x50] sm:$0xff] %v2799_v1  ;;  %315 = vst [vmem:[#allocation2 + $0x58] sm:$0xff] %v2799_v1  ;;  %v377_v9 = vand.u32 15, %v365_v5  ;;  %v404_v10 = vadd.s32 1, %v370_v6  ;;  %v390_v11 = vadd.s32 4294967295, %v370_v6  ;;  %v351_v14 = vld [vmem:[%s295_s17] sm:$0xff]  ;;  %v2955_v21 = vpack.c.bf16 %v345_v13, %v345_v13 }
  0x1c   : > { %316 = vst [vmem:[#allocation2 + $0x60] sm:$0xff] %v2799_v1  ;;  %317 = vst [vmem:[#allocation2 + $0x68] sm:$0xff] %v2799_v1  ;;  %v355_v18 = vld [vmem:[%s295_s17 + $0x20] sm:$0xff]  ;;  %v357_v19 = vld [vmem:[%s295_s17 + $0x30] sm:$0xff]  ;;  %v2957_v22 = vpack.c.bf16 %v353_v15, %v351_v14  ;;  %v347_v27 = vcombine.high %v345_v13, %v345_v13 }
  0x1d   : > { %318 = vst [vmem:[#allocation2 + $0x70] sm:$0xff] %v2799_v1  ;;  %319 = vst [vmem:[#allocation2 + $0x78] sm:$0xff] %v2799_v1  ;;  %v405_v16 = vadd.s32 1, %v377_v9  ;;  %vm408_vm2 = vcmp.lt.s32.totalorder %v404_v10, 16  ;;  %v391_v17 = vadd.s32 4294967295, %v377_v9  ;;  %vm392_vm3 = vcmp.ge.s32.totalorder %v390_v11, 0 }
  0x1e   : > { %320 = vst [vmem:[#allocation2 + $0x80] sm:$0xff] %v2799_v1  ;;  %321 = vst [vmem:[#allocation2 + $0x88] sm:$0xff] %v2799_v1  ;;  %v352_v23 = vld [vmem:[%s295_s17 + $0x8] sm:$0xff]  ;;  %v354_v24 = vld [vmem:[%s295_s17 + $0x18] sm:$0xff]  ;;  %v2960_v26 = vpack.c.bf16 %v357_v19, %v355_v18  ;;  %v2979_v34 = vpack.c.bf16 %v347_v27, %v347_v27 }
  0x1f   : > { %322 = vst [vmem:[#allocation2 + $0x90] sm:$0xff] %v2799_v1  ;;  %326 = vst [vmem:[#allocation2 + $0xb0] sm:$0xff] %v2799_v1  ;;  %v356_v25 = vld [vmem:[%s295_s17 + $0x28] sm:$0xff]  ;;  %vm409_vm5 = vcmp.lt.s32.totalorder %v405_v16, 16  ;;  %vm393_vm6 = vcmp.ge.s32.totalorder %v391_v17, 0  ;;  %v358_v28 = vld [vmem:[%s295_s17 + $0x38] sm:$0xff]  ;;  %v2970_v31 = vpack.c.bf16 %v354_v24, %v352_v23  ;;  %s3710_s17 = scalar_lea.hbm %s3799_s6, %s3803_s13 }
  0x20   : > { %327 = vst [vmem:[#allocation2 + $0xb8] sm:$0xff] %v2799_v1  ;;  %328 = vst [vmem:[#allocation2 + $0xc0] sm:$0xff] %v2799_v1  ;;  %v2981_v35 = vpack.c.bf16 %v358_v28, %v356_v25 }
  0x21   : > { %329 = vst [vmem:[#allocation2 + $0xc8] sm:$0xff] %v2799_v1  ;;  %330 = vst [vmem:[#allocation2 + $0xd0] sm:$0xff] %v2799_v1 }
  0x22   : > { %331 = vst [vmem:[#allocation2 + $0xd8] sm:$0xff] %v2799_v1  ;;  %332 = vst [vmem:[#allocation2 + $0xe0] sm:$0xff] %v2799_v1 }
  0x23   : > { %333 = vst [vmem:[#allocation2 + $0xe8] sm:$0xff] %v2799_v1  ;;  %334 = vst [vmem:[#allocation2 + $0xf0] sm:$0xff] %v2799_v1 }
  0x24   : > { %335 = vst [vmem:[#allocation2 + $0xf8] sm:$0xff] %v2799_v1  ;;  %336 = vst [vmem:[#allocation2 + $0x100] sm:$0xff] %v2799_v1 }
  0x25   : > { %337 = vst [vmem:[#allocation2 + $0x108] sm:$0xff] %v2799_v1  ;;  %338 = vst [vmem:[#allocation2 + $0x110] sm:$0xff] %v2799_v1 }
  0x26   : > { %339 = vst [vmem:[#allocation2 + $0x118] sm:$0xff] %v2799_v1  ;;  %340 = vst [vmem:[#allocation2 + $0x120] sm:$0xff] %v2799_v1 }
  0x27   : > { %341 = vst [vmem:[#allocation2 + $0x128] sm:$0xff] %v2799_v1  ;;  %342 = vst [vmem:[#allocation2 + $0x130] sm:$0xff] %v2799_v1 }
  0x28   : > { %343 = vst [vmem:[#allocation2 + $0x138] sm:$0xff] %v2799_v1  ;;  %344 = vst [vmem:[#allocation2 + $0x140] sm:$0x33] %v2799_v1 }
  0x29   : > { %vm525_vm1 = vmpackc.low %vm2800_vm0, %vm2800_vm0 }
  0x2a   : > { %v526_v4 = vsel %vm525_vm1, 65537, %v2799_v1  ;;  %vm610_vm7 = vmpackc.low %vm409_vm5, %vm408_vm2  ;;  %vm624_vm1 = vcmask 924672   ;;  %vm3800_vm2 = vcmask 908288  }
  0x2b   : > { %v2951_v12 = vrot.slane %v526_v4, %v420_v7  ;;  %v2953_v20 = vrot.slane %v526_v4, %v424_v8  ;;  %v611_v32 = vsel %vm610_vm7, 65537, %v2799_v1  ;;  %vm416_vm9 = vmpackc.low %vm393_vm6, %vm392_vm3 }
  0x2c   : > { %v615_v36 = vrot.slane %v611_v32, %v420_v7  ;;  %v417_v37 = vsel %vm416_vm9, 65537, %v2799_v1  ;;  %v619_v40 = vrot.slane %v611_v32, %v424_v8  ;;  %vm2999_vm12 = vmor %vm471_vm11, %vm448_vm10  ;;  %vm638_vm9 = vcmask 121856  }
  0x2d   : > { %vm780_vm4 = vcmp.ne.s16.totalorder %v2951_v12, 0  ;;  %vm781_vm8 = vcmp.ne.s16.totalorder %v2953_v20, 0  ;;  %v421_v39 = vrot.slane %v417_v37, %v420_v7  ;;  %v425_v47 = vrot.slane %v417_v37, %v424_v8 }
  0x2e   : > { %v782_v29 = vsel %vm780_vm4, %v2955_v21, 0  ;;  %v791_v30 = vsel %vm780_vm4, %v2957_v22, 0  ;;  %v2977_v33 = vsel %vm780_vm4, %v2960_v26, 0  ;;  %v792_v38 = vsel %vm781_vm8, %v2970_v31, 0  ;;  %620 = vrot.lane.b32.xlu0 %v615_v36, %s2801_s18 }
  0x2f   : > { %v783_v41 = vsel %vm781_vm8, %v2979_v34, 0  ;;  %v2987_v42 = vsel %vm781_vm8, %v2981_v35, 0  ;;  %v2300_v44 = vcombine.low %v791_v30, %v792_v38  ;;  %v2301_v45 = vcombine.high %v791_v30, %v792_v38  ;;  %709 = vrot.lane.b32.xlu1 %v421_v39, %s2802_s19 }
  0x30   : > { %v2299_v43 = vcombine.low %v782_v29, %v783_v41  ;;  %v2302_v46 = vcombine.low %v2977_v33, %v2987_v42 }
  0x31   : > { %v811_v48 = vrot.slane %v2300_v44, 6  ;;  %v813_v49 = vrot.slane %v2301_v45, 6 }
  0x32   : > { %790 = vst [vmem:[#allocation2 + $0x90] sm:$0x33] %v2299_v43  ;;  %v2993_v50 = vrot.slane %v2302_v46, 6  ;;  %622 = vrot.lane.b32.xlu0 %v619_v40, %s2801_s18 }
  0x33   : > { %v812_v51 = vrot.slane %v811_v48, 4  ;;  %v815_v52 = vrot.slane %v813_v49, 4  ;;  %827 = vst [vmem:[#allocation2 + $0x90] sm:$0xcc] %v811_v48  ;;  %711 = vrot.lane.b32.xlu1 %v425_v47, %s2802_s19 }
  0x35   : > { %v814_v54 = vsel %vm2999_vm12, %v812_v51, %v813_v49  ;;  %v817_v55 = vsel %vm2999_vm12, %v815_v52, %v2993_v50 }
  0x36   : > { %828 = vst [vmem:[#allocation2 + $0x98] sm:$0xff] %v814_v54  ;;  %829 = vst [vmem:[#allocation2 + $0xa0] sm:$0xff] %v817_v55  ;;  %535 = vrot.lane.b32.xlu0 %v2951_v12, %s2803_s20 }
  0x37   : > { %537 = vrot.lane.b32.xlu1 %v2953_v20, %s2803_s20 }
  0x3a   : > { %426 = vrot.lane.b32.xlu0 %v421_v39, %s2804_s26 }
  0x3b   : > { %428 = vrot.lane.b32.xlu1 %v425_v47, %s2804_s26 }
  0x3e   : > { %903 = vrot.lane.b32.xlu0 %v421_v39, %s2805_s28 }
  0x3f   : > { %905 = vrot.lane.b32.xlu1 %v425_v47, %s2805_s28 }
  0x42   : > { %991 = vrot.lane.b32.xlu0 %v2951_v12, %s2806_s29 }
  0x43   : > { %993 = vrot.lane.b32.xlu1 %v2953_v20, %s2806_s29 }
  0x46   : > { %832 = vrot.lane.b32.xlu0 %v615_v36, %s2807_s10 }
  0x47   : > { %834 = vrot.lane.b32.xlu1 %v619_v40, %s2807_s10 }
  0x4a   : > { %1060 = vrot.lane.b32.xlu0 %v615_v36, %s2808_s12 }
  0x4b   : > { %1062 = vrot.lane.b32.xlu1 %v619_v40, %s2808_s12 }
  0xa0   : > { %v621_v56 = vpop.permute.xlu0 %620 }
  0xa1   : > { %v710_v57 = vpop.permute.xlu1 %709 }
  0xa4   : > { %v3024_v58 = vpop.permute.xlu0 %622 }
  0xa5   : > { %v3026_v59 = vpop.permute.xlu1 %711  ;;  %v625_v11 = vsel %vm624_vm1, %v621_v56, %v3024_v58  ;;  %vm627_vm5 = vcmp.ne.s16.totalorder %v3024_v58, 0 }
  0xa6   : > { %v3033_v2 = vsel %vm3801_vm14, %v710_v57, %v3026_v59  ;;  %vm716_vm4 = vcmp.ne.s16.totalorder %v3026_v59, 0  ;;  %vm626_vm6 = vcmp.ne.s16.totalorder %v625_v11, 0  ;;  %v629_v18 = vsel %vm627_vm5, %v2979_v34, 0 }
  0xa7   : > { %vm715_vm3 = vcmp.ne.s16.totalorder %v3033_v2, 0  ;;  %v735_v17 = vsel %vm716_vm4, %v2970_v31, 0  ;;  %v647_v19 = vsel %vm627_vm5, %v2981_v35, 0  ;;  %v628_v20 = vsel %vm626_vm6, %v2955_v21, 0 }
  0xa8   : > { %v536_v60 = vpop.permute.xlu0 %535  ;;  %v734_v16 = vsel %vm715_vm3, %v2957_v22, 0  ;;  %v646_v23 = vsel %vm626_vm6, %v2960_v26, 0  ;;  %v717_v27 = vsel %vm715_vm3, %v2955_v21, 0  ;;  %v718_v28 = vsel %vm716_vm4, %v2979_v34, 0 }
  0xa9   : > { %v538_v61 = vpop.permute.xlu1 %537  ;;  %v2295_v24 = vcombine.low %v734_v16, %v735_v17  ;;  %v2292_v38 = vcombine.low %v646_v23, %v647_v19  ;;  %v2289_v39 = vcombine.low %v628_v20, %v629_v18  ;;  %v2296_v40 = vcombine.high %v734_v16, %v735_v17 }
  0xaa   : > { %v540_v62 = vsel %vm539_vm13, %v536_v60, %v538_v61  ;;  %vm542_vm15 = vcmp.ne.s16.totalorder %v538_v61, 0  ;;  %v2294_v41 = vcombine.low %v717_v27, %v718_v28  ;;  %v644_v45 = vsel %vm626_vm6, %v2957_v22, 0 }
  0xab   : > { %vm541_vm0 = vcmp.ne.s16.totalorder %v540_v62, 0  ;;  %v561_v63 = vsel %vm542_vm15, %v2970_v31, 0  ;;  %v563_v0 = vsel %vm542_vm15, %v2981_v35, 0  ;;  %v544_v10 = vsel %vm542_vm15, %v2979_v34, 0 }
  0xac   : > { %v560_v3 = vsel %vm541_vm0, %v2957_v22, 0  ;;  %v562_v4 = vsel %vm541_vm0, %v2960_v26, 0  ;;  %v427_v7 = vpop.permute.xlu0 %426  ;;  %v543_v9 = vsel %vm541_vm0, %v2955_v21, 0  ;;  %v645_v46 = vsel %vm627_vm5, %v2970_v31, 0 }
  0xad   : > { %v2288_v5 = vcombine.high %v562_v4, %v563_v0  ;;  %v2286_v6 = vcombine.high %v560_v3, %v561_v63  ;;  %v3037_v8 = vpop.permute.xlu1 %428  ;;  %v2287_v13 = vcombine.low %v562_v4, %v563_v0  ;;  %v2285_v14 = vcombine.low %v560_v3, %v561_v63 }
  0xae   : > { %v3049_v12 = vsel %vm3800_vm2, %v427_v7, %v3037_v8  ;;  %v2284_v15 = vcombine.low %v543_v9, %v544_v10  ;;  %vm433_vm8 = vcmp.ne.s16.totalorder %v3037_v8, 0  ;;  %v2293_v51 = vcombine.high %v646_v23, %v647_v19 }
  0xaf   : > { %586 = vrot.lane.b32.xlu1 %v2288_v5, %s2806_s29  ;;  %582 = vrot.lane.b32.xlu0 %v2286_v6, %s2806_s29  ;;  %vm432_vm7 = vcmp.ne.s16.totalorder %v3049_v12, 0  ;;  %v3086_v30 = vsel %vm433_vm8, %v2981_v35, 0  ;;  %v435_v37 = vsel %vm433_vm8, %v2979_v34, 0  ;;  %v669_v52 = vrot.slane %v2292_v38, 6 }
  0xb0   : > { %v550_v25 = vrot.slane %v2284_v15, 6  ;;  %v3081_v29 = vsel %vm432_vm7, %v2960_v26, 0  ;;  %v434_v36 = vsel %vm432_vm7, %v2955_v21, 0  ;;  %v3098_v43 = vpop.permute.xlu0 %903  ;;  %v724_v54 = vrot.slane %v2294_v41, 6 }
  0xb1   : > { %v2283_v32 = vcombine.high %v3081_v29, %v3086_v30  ;;  %v906_v44 = vpop.permute.xlu1 %905  ;;  %v2279_v48 = vcombine.low %v434_v36, %v435_v37  ;;  %v2290_v55 = vcombine.low %v644_v45, %v645_v46  ;;  %v2291_v58 = vcombine.high %v644_v45, %v645_v46 }
  0xb2   : > { %v3111_v49 = vsel %vm638_vm9, %v3098_v43, %v906_v44  ;;  %vm908_vm15 = vcmp.ne.s16.totalorder %v3098_v43, 0  ;;  %vm554_vm5 = vcmask 130048   ;;  %v672_v61 = vrot.slane %v2293_v51, 6 }
  0xb3   : > { %584 = vrot.lane.b32.xlu1 %v2287_v13, %s2806_s29  ;;  %580 = vrot.lane.b32.xlu0 %v2285_v14, %s2806_s29  ;;  %v3105_v47 = vrot.slane %v2283_v32, 6  ;;  %vm909_vm0 = vcmp.ne.s16.totalorder %v3111_v49, 0  ;;  %v664_v62 = vrot.slane %v2290_v55, 6  ;;  %v671_v63 = vrot.slane %v669_v52, 4 }
  0xb4   : > { %v3113_v56 = vpop.permute.xlu0 %991  ;;  %v666_v0 = vrot.slane %v2291_v58, 6  ;;  %v3123_v3 = vsel %vm908_vm15, %v2960_v26, 0  ;;  %v3128_v4 = vsel %vm909_vm0, %v2981_v35, 0  ;;  %vm3802_vm6 = vcmask 7168  }
  0xb5   : > { %v994_v57 = vpop.permute.xlu1 %993  ;;  %v484_v60 = vrot.slane %v3105_v47, 4  ;;  %v2313_v5 = vcombine.high %v3123_v3, %v3128_v4  ;;  %v452_v10 = vsel %vm433_vm8, %v2970_v31, 0  ;;  %v451_v11 = vsel %vm432_vm7, %v2957_v22, 0 }
  0xb6   : > { %v3136_v6 = vsel %vm554_vm5, %v3113_v56, %v994_v57  ;;  %v673_v13 = vsel %vm2999_vm12, %v671_v63, %v672_v61  ;;  %v674_v14 = vrot.slane %v672_v61, 4  ;;  %vm996_vm2 = vcmp.ne.s16.totalorder %v3113_v56, 0 }
  0xb7   : > { %754 = vrot.lane.b32.xlu0 %v2295_v24, %s2807_s10  ;;  %551 = vrot.lane.b32.xlu1 %v550_v25, %s2806_s29  ;;  %v665_v15 = vrot.slane %v664_v62, 4  ;;  %vm997_vm14 = vcmp.ne.s16.totalorder %v3136_v6, 0  ;;  %v668_v16 = vrot.slane %v666_v0, 4  ;;  %v3157_v8 = vsel %vm715_vm3, %v2960_v26, 0 }
  0xb8   : > { %v3138_v7 = vpop.permute.xlu0 %832  ;;  %v3162_v12 = vsel %vm716_vm4, %v2981_v35, 0  ;;  %v3164_v18 = vrot.slane %v2313_v5, 6  ;;  %v998_v19 = vsel %vm996_vm2, %v2955_v21, 0  ;;  %v999_v2 = vsel %vm997_vm14, %v2979_v34, 0 }
  0xb9   : > { %v835_v9 = vpop.permute.xlu1 %834  ;;  %vm837_vm3 = vcmp.ne.s16.totalorder %v3138_v7, 0  ;;  %v2280_v59 = vcombine.low %v451_v11, %v452_v10  ;;  %v670_v20 = vsel %vm2999_vm12, %v668_v16, %v669_v52  ;;  %v667_v23 = vsel %vm2999_vm12, %v665_v15, %v666_v0 }
  0xba   : > { %v3152_v17 = vsel %vm3802_vm6, %v3138_v7, %v835_v9  ;;  %v2297_v24 = vcombine.low %v3157_v8, %v3162_v12  ;;  %v2298_v25 = vcombine.high %v3157_v8, %v3162_v12  ;;  %v956_v27 = vrot.slane %v3164_v18, 4 }
  0xbb   : > { %635 = vrot.lane.b32.xlu0 %v2289_v39, %s2805_s28  ;;  %756 = vrot.lane.b32.xlu1 %v2296_v40, %s2807_s10  ;;  %vm838_vm7 = vcmp.ne.s16.totalorder %v3152_v17, 0  ;;  %v858_v28 = vsel %vm837_vm3, %v2960_v26, 0  ;;  %v474_v36 = vrot.slane %v2280_v59, 6  ;;  %v2314_v37 = vcombine.low %v998_v19, %v999_v2 }
  0xbc   : > { %v859_v32 = vsel %vm838_vm7, %v2981_v35, 0  ;;  %v2281_v38 = vcombine.high %v451_v11, %v452_v10  ;;  %v2282_v39 = vcombine.low %v3081_v29, %v3086_v30  ;;  %v926_v40 = vsel %vm908_vm15, %v2957_v22, 0  ;;  %v1061_v57 = vpop.permute.xlu0 %1060 }
  0xbd   : > { %v927_v41 = vsel %vm909_vm0, %v2970_v31, 0  ;;  %v2308_v44 = vcombine.high %v858_v28, %v859_v32  ;;  %v1005_v45 = vrot.slane %v2314_v37, 6  ;;  %v910_v29 = vsel %vm908_vm15, %v2955_v21, 0  ;;  %v1063_v58 = vpop.permute.xlu1 %1062 }
  0xbe   : > { %v2310_v46 = vcombine.low %v926_v40, %v927_v41  ;;  %v479_v51 = vrot.slane %v2282_v39, 6  ;;  %v911_v30 = vsel %vm909_vm0, %v2979_v34, 0  ;;  %v2312_v52 = vcombine.low %v3123_v3, %v3128_v4 }
  0xbf   : > { %725 = vrot.lane.b32.xlu0 %v724_v54, %s2807_s10  ;;  %441 = vrot.lane.b32.xlu1 %v2279_v48, %s2808_s12  ;;  %v476_v48 = vrot.slane %v2281_v38, 6  ;;  %v2309_v54 = vcombine.low %v910_v29, %v911_v30  ;;  %vm444_vm4 = vcmask 138240   ;;  %v2311_v49 = vcombine.high %v926_v40, %v927_v41 }
  0xc0   : > { %v946_v55 = vrot.slane %v2310_v46, 6  ;;  %v1064_v43 = vsel %vm444_vm4, %v1061_v57, %v1063_v58  ;;  %v856_v63 = vsel %vm837_vm3, %v2957_v22, 0  ;;  %v857_v0 = vsel %vm838_vm7, %v2970_v31, 0 }
  0xc1   : > { %v478_v61 = vrot.slane %v476_v48, 4  ;;  %v475_v3 = vrot.slane %v474_v36, 4  ;;  %vm1065_vm8 = vcmp.ne.s16.totalorder %v1061_v57, 0  ;;  %vm1066_vm15 = vcmp.ne.s16.totalorder %v1064_v43, 0 }
  0xc2   : > { %v948_v9 = vrot.slane %v2311_v49, 6  ;;  %v2306_v10 = vcombine.high %v856_v63, %v857_v0  ;;  %v1084_v11 = vsel %vm1065_vm8, %v2960_v26, 0  ;;  %v818_v16 = vrot.slane %v2993_v50, 4 }
  0xc3   : > { %493 = vrot.lane.b32.xlu0 %v484_v60, %s2808_s12  ;;  %675 = vrot.lane.b32.xlu1 %v664_v62, %s2805_s28  ;;  %v481_v60 = vrot.slane %v479_v51, 4  ;;  %v951_v62 = vrot.slane %v2312_v52, 6  ;;  %v480_v5 = vsel %vm2999_vm12, %v478_v61, %v479_v51  ;;  %v839_v19 = vsel %vm837_vm3, %v2955_v21, 0 }
  0xc4   : > { %v2307_v2 = vcombine.low %v858_v28, %v859_v32  ;;  %v2303_v59 = vcombine.high %v2977_v33, %v2987_v42  ;;  %v1082_v50 = vsel %vm1065_vm8, %v2957_v22, 0  ;;  %v1083_v7 = vsel %vm1066_vm15, %v2970_v31, 0 }
  0xc5   : > { %v483_v4 = vsel %vm2999_vm12, %v481_v60, %v3105_v47  ;;  %v477_v47 = vsel %vm2999_vm12, %v475_v3, %v476_v48  ;;  %v1067_v41 = vsel %vm1065_vm8, %v2955_v21, 0  ;;  %v2305_v48 = vcombine.low %v856_v63, %v857_v0 }
  0xc6   : > { %v819_v33 = vrot.slane %v2303_v59, 6  ;;  %v2320_v29 = vcombine.low %v1082_v50, %v1083_v7  ;;  %v1016_v21 = vsel %vm996_vm2, %v2960_v26, 0  ;;  %v1014_v43 = vsel %vm996_vm2, %v2957_v22, 0 }
  0xc7   : > { %681 = vrot.lane.b32.xlu0 %v673_v13, %s2805_s28  ;;  %683 = vrot.lane.b32.xlu1 %v674_v14, %s2805_s28  ;;  %v1085_v13 = vsel %vm1066_vm15, %v2981_v35, 0  ;;  %v953_v14 = vrot.slane %v951_v62, 4  ;;  %v1015_v49 = vsel %vm997_vm14, %v2970_v31, 0  ;;  %vm774_vm0 = vcmask 1043464  }
  0xc8   : > { %v2323_v15 = vcombine.high %v1084_v11, %v1085_v13  ;;  %v3257_v17 = vsel %vm2999_vm12, %v818_v16, %v819_v33  ;;  %v821_v32 = vrot.slane %v819_v33, 4  ;;  %v2315_v56 = vcombine.low %v1014_v43, %v1015_v49 }
  0xc9   : > { %v2316_v22 = vcombine.high %v1014_v43, %v1015_v49  ;;  %vm511_vm3 = vcmask 1047558   ;;  %v1223_v43 = vld [vmem:[%s3797_s4 + $0x18] sm:$0xff]  ;;  %v1222_v49 = vld [vmem:[%s3797_s4 + $0x10] sm:$0xff] }
  0xca   : > { %v1110_v28 = vrot.slane %v2323_v15, 6  ;;  %831 = vst [vmem:[#allocation2 + $0xb0] sm:$0x33] %v821_v32 }
  0xcb   : > { %679 = vrot.lane.b32.xlu0 %v670_v20, %s2805_s28  ;;  %677 = vrot.lane.b32.xlu1 %v667_v23, %s2805_s28  ;;  %v840_v20 = vsel %vm838_vm7, %v2979_v34, 0  ;;  %v947_v23 = vrot.slane %v946_v55, 4  ;;  %vm557_vm7 = vcmask 1043586  }
  0xcc   : > { %v2304_v42 = vcombine.low %v839_v19, %v840_v20  ;;  %v1112_v39 = vrot.slane %v1110_v28, 4 }
  0xcd   : > { %v949_v38 = vsel %vm2999_vm12, %v947_v23, %v948_v9 }
  0xce   : > { %v846_v40 = vrot.slane %v2304_v42, 6 }
  0xcf   : > { %485 = vrot.lane.b32.xlu0 %v474_v36, %s2808_s12  ;;  %965 = vrot.lane.b32.xlu1 %v956_v27, %s2801_s18  ;;  %v955_v27 = vsel %vm2999_vm12, %v953_v14, %v3164_v18  ;;  %v950_v36 = vrot.slane %v948_v9, 4  ;;  %v2321_v18 = vcombine.high %v1082_v50, %v1083_v7 }
  0xd1   : > { %v952_v37 = vsel %vm2999_vm12, %v950_v36, %v951_v62  ;;  %v1104_v46 = vrot.slane %v2321_v18, 6 }
  0xd3   : > { %1006 = vrot.lane.b32.xlu0 %v1005_v45, %s2803_s20  ;;  %882 = vrot.lane.b32.xlu1 %v2308_v44, %s2802_s19  ;;  %v1068_v44 = vsel %vm1066_vm15, %v2979_v34, 0  ;;  %v2322_v45 = vcombine.low %v1084_v11, %v1085_v13  ;;  %v1106_v52 = vrot.slane %v1104_v46, 4  ;;  %v1017_v34 = vsel %vm997_vm14, %v2981_v35, 0  ;;  %vm558_vm15 = vmor %vm511_vm3, %vm557_vm7 }
  0xd4   : > { %v2319_v51 = vcombine.low %v1067_v41, %v1068_v44  ;;  %v2318_v58 = vcombine.high %v1016_v21, %v1017_v34  ;;  %v2317_v26 = vcombine.low %v1016_v21, %v1017_v34  ;;  %vm600_vm14 = vcmask 1043584  }
  0xd5   : > { %v1107_v30 = vrot.slane %v2322_v45, 6  ;;  %vm447_vm7 = vcmask 1041544  }
  0xd7   : > { %917 = vrot.lane.b32.xlu0 %v2309_v54, %s2801_s18  ;;  %957 = vrot.lane.b32.xlu1 %v946_v55, %s2801_s18  ;;  %v1102_v54 = vrot.slane %v2320_v29, 6  ;;  %v1108_v55 = vsel %vm2999_vm12, %v1106_v52, %v1107_v30  ;;  %v1109_v57 = vrot.slane %v1107_v30, 4  ;;  %v1231_v29 = vld [vmem:[%s3797_s4 + $0x58] sm:$0xff] }
  0xd9   : > { %v1103_v60 = vrot.slane %v1102_v54, 4  ;;  %v1111_v61 = vsel %vm2999_vm12, %v1109_v57, %v1110_v28 }
  0xdb   : > { %491 = vrot.lane.b32.xlu0 %v483_v4, %s2808_s12  ;;  %489 = vrot.lane.b32.xlu1 %v480_v5, %s2808_s12  ;;  %v1105_v35 = vsel %vm2999_vm12, %v1103_v60, %v1104_v46  ;;  %vm515_vm12 = vcmask 1047556   ;;  %v1220_v60 = vld [vmem:[%s3797_s4] sm:$0xff] }
  0xdc   : > { %vm3311_vm2 = vmor %vm515_vm12, %vm600_vm14  ;;  %vm641_vm14 = vcmask 1041528  }
  0xdd   : > { %vm3328_vm8 = vmor %vm515_vm12, %vm774_vm0  ;;  %vm731_vm0 = vcmask 1043466  }
  0xdf   : > { %878 = vrot.lane.b32.xlu0 %v2306_v10, %s2802_s19  ;;  %487 = vrot.lane.b32.xlu1 %v477_v47, %s2808_s12  ;;  %s3674_s12 = sand.u32 1, %s2789_s22  }
  0xe0   : > { %s2271_s9 = sshll.u32 %s3674_s12, 6 }
  0xe3   : > { %963 = vrot.lane.b32.xlu0 %v955_v27, %s2801_s18  ;;  %880 = vrot.lane.b32.xlu1 %v2307_v2, %s2802_s19 }
  0xe7   : > { %961 = vrot.lane.b32.xlu0 %v952_v37, %s2801_s18  ;;  %959 = vrot.lane.b32.xlu1 %v949_v38, %s2801_s18  ;;  %s2120_s18 = scalar_lea.sflag [#allocation6], %s3674_s12 }
  0xeb   : > { %1121 = vrot.lane.b32.xlu0 %v1112_v39, %s2804_s26  ;;  %847 = vrot.lane.b32.xlu1 %v846_v40, %s2802_s19 }
  0xef   : > { %876 = vrot.lane.b32.xlu0 %v2305_v48, %s2802_s19  ;;  %1074 = vrot.lane.b32.xlu1 %v2319_v51, %s2804_s26 }
  0xf3   : > { %1113 = vrot.lane.b32.xlu0 %v1102_v54, %s2804_s26  ;;  %1117 = vrot.lane.b32.xlu1 %v1108_v55, %s2804_s26 }
  0xf7   : > { %1119 = vrot.lane.b32.xlu0 %v1111_v61, %s2804_s26  ;;  %1040 = vrot.lane.b32.xlu1 %v2318_v58, %s2803_s20  ;;  %v1221_v61 = vld [vmem:[%s3797_s4 + $0x8] sm:$0xff] }
  0xfb   : > { %1038 = vrot.lane.b32.xlu0 %v2317_v26, %s2803_s20  ;;  %1115 = vrot.lane.b32.xlu1 %v1105_v35, %s2804_s26 }
  0xff   : > { %758 = vrot.lane.b32.xlu0 %v2297_v24, %s2807_s10  ;;  %760 = vrot.lane.b32.xlu1 %v2298_v25, %s2807_s10  ;;  %s3670_s10 = scalar_lea.vmem %s3795_s2, %s2432_s11  ;;  %s3685_s11 = scalar_lea.vmem [#allocation5], %s2271_s9 }
 0x100   : > { %s2149_s14 = sshll.u32 %s3685_s11, 4  ;;  %s3712_s14 = int_to_ptr.vmem [resolvable:$true] %s2149_s14 }
 0x101   : > { %s2707_s19 = scalar_lea.vmem %s3712_s14, 1024 }
 0x102   : > { %p2708_p11 = scmp.ne.s32.totalorder %s3712_s14, %s2707_s19 }
 0x103   : > { %1034 = vrot.lane.b32.xlu0 %v2315_v56, %s2803_s20  ;;  %1036 = vrot.lane.b32.xlu1 %v2316_v22, %s2803_s20  ;;  %s2809_s20 = smov [#allocation5]  }
 0x104   : > { %p2709_p12 = pnand %p2708_p11, %p2885_p5  ;;  %s2711_s26 = sshll.u32 %s2809_s20, 4  ;;  %s2712_s26 = int_to_ptr.vmem [resolvable:$false] %s2711_s26 }
 0x105   : > { %s2713_s28 = scalar_lea.vmem %s2712_s26, 2048  ;;  %p2714_p0 = scmp.lt.s32.totalorder %s3712_s14, %s2712_s26 }
 0x106   : > { %p2710_p13 = pneg %p2709_p12  ;;  %p2715_p1 = scmp.lt.s32.totalorder %s2713_s28, %s2707_s19 }
 0x107   : > { %1238 = vperm.xlu0 %2491, %v1220_v60   ;;  %1243 = vperm.xlu1 %2492, %v1221_v61  }
 0x108   : > { %p2716_p2 = por %p2715_p1, %p2714_p0 }
 0x10a   : > { %p2717_p3 = pnand %p2716_p2, %p2710_p13 }
 0x10b   : > { %1253 = vperm.xlu0 %2491, %v1223_v43   ;;  %1248 = vperm.xlu1 %2492, %v1222_v49  }
 0x121   : > { %v587_v31 = vpop.permute.xlu1 %586  ;;  %v583_v6 = vpop.permute.xlu0 %582 }
 0x122   : > { %v591_v8 = vrot.slane %v587_v31, 4  ;;  %v589_v12 = vrot.slane %v583_v6, 4 }
 0x124   : > { %v595_v25 = vsel %vm554_vm5, %v591_v8, %v587_v31  ;;  %v593_v62 = vsel %vm554_vm5, %v589_v12, %v583_v6  ;;  %v1225_v8 = vld [vmem:[%s3797_s4 + $0x28] sm:$0xff] }
 0x125   : > { %605 = vst.msk [vmem:[#allocation2 + $0x40] sm:$0xff] %vm3311_vm2, %v595_v25  ;;  %603 = vst.msk [vmem:[#allocation2 + $0x30] sm:$0xff] %vm3311_vm2, %v593_v62  ;;  %v585_v63 = vpop.permute.xlu1 %584  ;;  %v581_v0 = vpop.permute.xlu0 %580  ;;  %1263 = vperm.xlu0 %2491, %v1225_v8  }
 0x126   : > { %v590_v3 = vrot.slane %v585_v63, 4  ;;  %v588_v4 = vrot.slane %v581_v0, 4 }
 0x128   : > { %v594_v5 = vsel %vm554_vm5, %v590_v3, %v585_v63  ;;  %v592_v9 = vsel %vm554_vm5, %v588_v4, %v581_v0 }
 0x129   : > { %604 = vst.msk [vmem:[#allocation2 + $0x38] sm:$0xff] %vm3311_vm2, %v594_v5  ;;  %602 = vst.msk [vmem:[#allocation2 + $0x28] sm:$0xff] %vm3311_vm2, %v592_v9  ;;  %v755_v11 = vpop.permute.xlu0 %754  ;;  %v552_v13 = vpop.permute.xlu1 %551  ;;  %v1224_v5 = vld [vmem:[%s3797_s4 + $0x20] sm:$0xff] }
 0x12a   : > { %v762_v47 = vrot.slane %v755_v11, 4  ;;  %v553_v14 = vrot.slane %v552_v13, 4  ;;  %vm3338_vm2 = vmor %vm448_vm10, %vm641_vm14  ;;  %vm700_vm14 = vcmask 1043578   ;;  %1258 = vperm.xlu1 %2492, %v1224_v5  }
 0x12c   : > { %v766_v15 = vsel %vm3802_vm6, %v762_v47, %v755_v11  ;;  %v555_v16 = vsel %vm554_vm5, %v553_v14, %v552_v13  ;;  %vm732_vm5 = vmor %vm511_vm3, %vm731_vm0  ;;  %v1227_v47 = vld [vmem:[%s3797_s4 + $0x38] sm:$0xff]  ;;  %v1187_v33 = vld [vmem:[#allocation2 + $0x40] sm:$0xff] }
 0x12d   : > { %776 = vst.msk [vmem:[#allocation2 + $0x70] sm:$0xff] %vm3328_vm8, %v766_v15  ;;  %v636_v19 = vpop.permute.xlu0 %635  ;;  %v757_v2 = vpop.permute.xlu1 %756  ;;  %vm701_vm0 = vmor %vm511_vm3, %vm700_vm14  ;;  %vm852_vm14 = vcmask 1043458   ;;  %1273 = vperm.xlu0 %2491, %v1227_v47  }
 0x12e   : > { %559 = vst.msk [vmem:[#allocation2 + $0x20] sm:$0xcc] %vm558_vm15, %v555_v16  ;;  %v637_v20 = vrot.slane %v636_v19, 4  ;;  %v763_v23 = vrot.slane %v757_v2, 4  ;;  %vm3350_vm15 = vmor %vm448_vm10, %vm447_vm7  ;;  %vm703_vm10 = vcmask 1043576  }
 0x12f   : > { %vm3364_vm7 = vmor %vm515_vm12, %vm703_vm10  ;;  %vm896_vm10 = vcmask 1043456  }
 0x130   : > { %v639_v27 = vsel %vm638_vm9, %v637_v20, %v636_v19  ;;  %v767_v36 = vsel %vm3802_vm6, %v763_v23, %v757_v2  ;;  %v1226_v20 = vld [vmem:[%s3797_s4 + $0x30] sm:$0xff] }
 0x131   : > { %643 = vst.msk [vmem:[#allocation2 + $0x48] sm:$0x33] %vm3338_vm2, %v639_v27  ;;  %v726_v50 = vpop.permute.xlu0 %725  ;;  %v442_v7 = vpop.permute.xlu1 %441  ;;  %1268 = vperm.xlu1 %2492, %v1226_v20  }
 0x132   : > { %777 = vst.msk [vmem:[#allocation2 + $0x78] sm:$0xff] %vm3328_vm8, %v767_v36  ;;  %v727_v28 = vrot.slane %v726_v50, 4  ;;  %v443_v42 = vrot.slane %v442_v7, 4 }
 0x134   : > { %v729_v32 = vsel %vm3802_vm6, %v727_v28, %v726_v50  ;;  %v445_v18 = vsel %vm444_vm4, %v443_v42, %v442_v7  ;;  %vm897_vm6 = vcmask 1039364   ;;  %v1229_v42 = vld [vmem:[%s3797_s4 + $0x48] sm:$0xff] }
 0x135   : > { %733 = vst.msk [vmem:[#allocation2 + $0x68] sm:$0xcc] %vm732_vm5, %v729_v32  ;;  %v494_v37 = vpop.permute.xlu0 %493  ;;  %v676_v38 = vpop.permute.xlu1 %675  ;;  %vm510_vm5 = vcmask 1043594   ;;  %1283 = vperm.xlu0 %2491, %v1229_v42  }
 0x136   : > { %450 = vst.msk [vmem:[#allocation2] sm:$0x33] %vm3350_vm15, %v445_v18  ;;  %v499_v39 = vrot.slane %v494_v37, 4  ;;  %v685_v40 = vrot.slane %v676_v38, 4 }
 0x138   : > { %v504_v41 = vsel %vm444_vm4, %v499_v39, %v494_v37  ;;  %v690_v44 = vsel %vm638_vm9, %v685_v40, %v676_v38  ;;  %v1228_v38 = vld [vmem:[%s3797_s4 + $0x40] sm:$0xff] }
 0x139   : > { %v2494_v45 = vld [vmem:[#allocation2 + $0x74] ss:$8 sps:$4 sm:$0xff]   ;;  %v2496_v46 = vld [vmem:[#allocation2 + $0x70] ss:$8 sps:$4 sm:$0xff]   ;;  %520 = vst.msk [vmem:[#allocation2 + $0x20] sm:$0x33] %vm3350_vm15, %v504_v41  ;;  %v682_v48 = vpop.permute.xlu0 %681  ;;  %v684_v51 = vpop.permute.xlu1 %683  ;;  %1278 = vperm.xlu1 %2492, %v1228_v38   ;;  %1293 = vperm.xlu0 %2491, %v1231_v29  }
 0x13a   : > { %702 = vst.msk [vmem:[#allocation2 + $0x48] sm:$0xcc] %vm701_vm0, %v690_v44  ;;  %v688_v30 = vrot.slane %v682_v48, 4  ;;  %v689_v52 = vrot.slane %v684_v51, 4  ;;  %1672 = vmatprep.subr.bf16.mxu0 %v2494_v45  ;;  %vm923_vm15 = vcmask 922628   ;;  %vm1011_vm0 = vcmask 916486  }
 0x13b   : > { %1673 = vmatpush1.bf16.msra.mxu0 %v2496_v46  ;;  %v1186_v44 = vld [vmem:[#allocation2 + $0x38] sm:$0xff] }
 0x13c   : > { %v693_v54 = vsel %vm638_vm9, %v688_v30, %v682_v48  ;;  %v694_v21 = vsel %vm638_vm9, %v689_v52, %v684_v51  ;;  %v2505_v45 = vld [vmem:[#allocation2 + $0x34] ss:$8 sps:$4 sm:$0xff]  }
 0x13d   : > { %707 = vst.msk [vmem:[#allocation2 + $0x60] sm:$0xff] %vm3364_vm7, %v693_v54  ;;  %v680_v34 = vpop.permute.xlu0 %679  ;;  %v678_v55 = vpop.permute.xlu1 %677  ;;  %v1185_v51 = vld [vmem:[#allocation2 + $0x30] sm:$0xff] }
 0x13e   : > { %708 = vst.msk [vmem:[#allocation2 + $0x68] sm:$0x33] %vm3338_vm2, %v694_v21  ;;  %v687_v57 = vrot.slane %v680_v34, 4  ;;  %v686_v58 = vrot.slane %v678_v55, 4  ;;  %vm3393_vm2 = vmor %vm511_vm3, %vm510_vm5  ;;  %vm982_vm5 = vcmask 924678   ;;  %v2354_v54 = vcombine.low %v1185_v51, %v1186_v44  ;;  %v1230_v21 = vld [vmem:[%s3797_s4 + $0x50] sm:$0xff] }
 0x13f   : > { %vm3412_vm3 = vmor %vm1011_vm0, %vm852_vm14  ;;  %1288 = vperm.xlu1 %2492, %v1230_v21   ;;  %v2553_v44 = vld [vmem:[%s3796_s3 + $0x18] ss:$12 sps:$4 sm:$0xff]  }
 0x140   : > { %v692_v26 = vsel %vm638_vm9, %v687_v57, %v680_v34  ;;  %v691_v35 = vsel %vm638_vm9, %v686_v58, %v678_v55  ;;  %vm3398_vm9 = vmor %vm923_vm15, %vm471_vm11  ;;  %vm3826_vm15 = vcmask 1039360   ;;  %v1183_v57 = vld [vmem:[#allocation2 + $0x20] sm:$0xff] }
 0x141   : > { %706 = vst.msk [vmem:[#allocation2 + $0x58] sm:$0xff] %vm3364_vm7, %v692_v26  ;;  %705 = vst.msk [vmem:[#allocation2 + $0x50] sm:$0xff] %vm3364_vm7, %v691_v35  ;;  %v486_v56 = vpop.permute.xlu0 %485  ;;  %v966_v22 = vpop.permute.xlu1 %965  ;;  %v1188_v36 = vld [vmem:[#allocation2 + $0x48] sm:$0xff] }
 0x142   : > { %v495_v31 = vrot.slane %v486_v56, 4  ;;  %v971_v24 = vrot.slane %v966_v22, 4  ;;  %vm3421_vm7 = vmor %vm897_vm6, %vm896_vm10  ;;  %v2503_v50 = vld [vmem:[#allocation2 + $0x44] ss:$8 sps:$4 sm:$0xff]   ;;  %v2356_v37 = vcombine.low %v1187_v33, %v1188_v36 }
 0x143   : > { %vm983_vm6 = vmor %vm982_vm5, %vm852_vm14  ;;  %v2507_v58 = vld [vmem:[#allocation2 + $0x24] ss:$8 sps:$4 sm:$0xff]   ;;  %vm1079_vm5 = vcmask 906244  }
 0x144   : > { %v500_v12 = vsel %vm444_vm4, %v495_v31, %v486_v56  ;;  %v976_v25 = vsel %vm624_vm1, %v966_v22, %v971_v24  ;;  %v1184_v26 = vld [vmem:[#allocation2 + $0x28] sm:$0xff]  ;;  %v1232_v56 = vld [vmem:[%s3797_s4 + $0x60] sm:$0xff]  ;;  %v1235_v24 = vld [vmem:[%s3797_s4 + $0x78] sm:$0xff] }
 0x145   : > { %v2497_v62 = vld [vmem:[#allocation2 + $0x64] ss:$8 sps:$4 sm:$0xff]   ;;  %513 = vst.msk [vmem:[#allocation2] sm:$0xcc] %vm3393_vm2, %v500_v12  ;;  %v1007_v0 = vpop.permute.xlu0 %1006  ;;  %v883_v3 = vpop.permute.xlu1 %882  ;;  %v2499_v4 = vld [vmem:[#allocation2 + $0x60] ss:$8 sps:$4 sm:$0xff]   ;;  %v2352_v53 = vcombine.low %v1183_v57, %v1184_v26  ;;  %1298 = vperm.xlu1 %2492, %v1232_v56  }
 0x146   : > { %990 = vst.msk [vmem:[#allocation2 + $0xf8] sm:$0x33] %vm3398_vm9, %v976_v25  ;;  %v1008_v9 = vrot.slane %v1007_v0, 4  ;;  %v887_v13 = vrot.slane %v883_v3, 4  ;;  %1674 = vmatprep.subr.bf16.mxu0 %v2497_v62  ;;  %vm514_vm2 = vcmask 1043592   ;;  %v1233_v35 = vld [vmem:[%s3797_s4 + $0x68] sm:$0xff] }
 0x147   : > { %1675 = vmatpush1.bf16.msra.mxu0 %v2499_v4  ;;  %vm3449_vm0 = vmor %vm515_vm12, %vm514_vm2  ;;  %vm985_vm12 = vcmask 924676   ;;  %1303 = vperm.xlu0 %2491, %v1233_v35  }
 0x148   : > { %v1009_v14 = vsel %vm539_vm13, %v1007_v0, %v1008_v9  ;;  %v891_v15 = vsel %vm3826_vm15, %v883_v3, %v887_v13  ;;  %v2500_v16 = vld [vmem:[#allocation2 + $0x54] ss:$8 sps:$4 sm:$0xff]   ;;  %v2502_v59 = vld [vmem:[#allocation2 + $0x50] ss:$8 sps:$4 sm:$0xff]  }
 0x149   : > { %1013 = vst.msk [vmem:[#allocation2 + $0xf8] sm:$0xcc] %vm3412_vm3, %v1009_v14  ;;  %v918_v19 = vpop.permute.xlu0 %917  ;;  %v958_v2 = vpop.permute.xlu1 %957  ;;  %1676 = vmatprep.subr.bf16.mxu0 %v2500_v16  ;;  %v1234_v3 = vld [vmem:[%s3797_s4 + $0x70] sm:$0xff] }
 0x14a   : > { %902 = vst.msk [vmem:[#allocation2 + $0xd0] sm:$0xff] %vm3421_vm7, %v891_v15  ;;  %v919_v23 = vrot.slane %v918_v19, 4  ;;  %v967_v27 = vrot.slane %v958_v2, 4  ;;  %1308 = vperm.xlu1 %2492, %v1234_v3   ;;  %v2532_v15 = vld [vmem:[#allocation2 + $0x94] ss:$8 sps:$4 sm:$0xff]  }
 0x14b   : > { %1677 = vmatpush1.bf16.msra.mxu0 %v2502_v59  ;;  %1313 = vperm.xlu0 %2491, %v1235_v24  }
 0x14c   : > { %v920_v7 = vsel %vm624_vm1, %v918_v19, %v919_v23  ;;  %v972_v28 = vsel %vm624_vm1, %v958_v2, %v967_v27  ;;  %1678 = vmatprep.subr.bf16.mxu0 %v2503_v50 }
 0x14d   : > { %925 = vst.msk [vmem:[#allocation2 + $0xd8] sm:$0x33] %vm3398_vm9, %v920_v7  ;;  %v492_v32 = vpop.permute.xlu0 %491  ;;  %v490_v18 = vpop.permute.xlu1 %489  ;;  %vm3829_vm9 = vmmov %vm3826_vm15  ;;  %vm853_vm15 = vcmask 1039366  }
 0x14e   : > { %984 = vst.msk [vmem:[#allocation2 + $0xd8] sm:$0xcc] %vm983_vm6, %v972_v28  ;;  %v498_v40 = vrot.slane %v492_v32, 4  ;;  %v497_v41 = vrot.slane %v490_v18, 4  ;;  %vm3832_vm3 = vmmov %vm3829_vm9 }
 0x14f   : > { %1679 = vmatpush1.bf16.msra.mxu0 %v2356_v37  ;;  %vm3501_vm6 = vmor %vm1079_vm5, %vm471_vm11  ;;  %v2544_v37 = vld [vmem:[%s3796_s3] ss:$12 sps:$4 sm:$0xff]  }
 0x150   : > { %v503_v46 = vsel %vm444_vm4, %v498_v40, %v492_v32  ;;  %v502_v48 = vsel %vm444_vm4, %v497_v41, %v490_v18  ;;  %1680 = vmatprep.subr.bf16.mxu0 %v2505_v45  ;;  %vm854_vm2 = vmor %vm853_vm15, %vm852_vm14 }
 0x151   : > { %519 = vst.msk [vmem:[#allocation2 + $0x18] sm:$0xff] %vm3449_vm0, %v503_v46  ;;  %518 = vst.msk [vmem:[#allocation2 + $0x10] sm:$0xff] %vm3449_vm0, %v502_v48  ;;  %v879_v30 = vpop.permute.xlu0 %878  ;;  %v488_v52 = vpop.permute.xlu1 %487  ;;  %v1205_v29 = vld [vmem:[#allocation2 + $0xd0] sm:$0xff] }
 0x152   : > { %v885_v34 = vrot.slane %v879_v30, 4  ;;  %v496_v55 = vrot.slane %v488_v52, 4 }
 0x153   : > { %1681 = vmatpush1.bf16.msra.mxu0 %v2354_v54 }
 0x154   : > { %v889_v60 = vsel %vm3829_vm9, %v879_v30, %v885_v34  ;;  %v501_v61 = vsel %vm444_vm4, %v496_v55, %v488_v52  ;;  %1682 = vmatprep.subr.bf16.mxu0 %v2507_v58  ;;  %vm3478_vm4 = vmor %vm985_vm12, %vm896_vm10  ;;  %vm1138_vm12 = vcmask 908294   ;;  %vm1141_vm9 = vcmask 908292   ;;  %v2570_v58 = vld [vmem:[%s3796_s3 + $0x80] ss:$12 sps:$4 sm:$0xff]  }
 0x155   : > { %900 = vst.msk [vmem:[#allocation2 + $0xc0] sm:$0xff] %vm3421_vm7, %v889_v60  ;;  %v964_v43 = vpop.permute.xlu0 %963  ;;  %v881_v49 = vpop.permute.xlu1 %880  ;;  %vm3517_vm5 = vmor %vm1138_vm12, %vm852_vm14  ;;  %v1206_v11 = vld [vmem:[#allocation2 + $0xd8] sm:$0xff] }
 0x156   : > { %517 = vst.msk [vmem:[#allocation2 + $0x8] sm:$0xff] %vm3449_vm0, %v501_v61  ;;  %v970_v31 = vrot.slane %v964_v43, 4  ;;  %v886_v6 = vrot.slane %v881_v49, 4  ;;  %vm3836_vm0 = vmmov %vm3832_vm3  ;;  %v2521_v46 = vld [vmem:[#allocation2 + $0xd4] ss:$8 sps:$4 sm:$0xff]   ;;  %v2374_v34 = vcombine.low %v1205_v29, %v1206_v11 }
 0x157   : > { %1683 = vmatpush1.bf16.msra.mxu0 %v2352_v53  ;;  %vm3522_vm15 = vmor %vm1141_vm9, %vm896_vm10  ;;  %v2554_v11 = vld [vmem:[%s3796_s3 + $0x20] ss:$12 sps:$4 sm:$0xff]   ;;  %v2561_v29 = vld [vmem:[%s3796_s3 + $0x48] ss:$12 sps:$4 sm:$0xff]  }
 0x158   : > { %v975_v8 = vsel %vm624_vm1, %v964_v43, %v970_v31  ;;  %v890_v12 = vsel %vm3832_vm3, %v881_v49, %v886_v6  ;;  %v2509_v25 = vld [vmem:[#allocation2 + $0x14] ss:$8 sps:$4 sm:$0xff]   ;;  %v2511_v0 = vld [vmem:[#allocation2 + $0x10] ss:$8 sps:$4 sm:$0xff]   ;;  %v1199_v6 = vld [vmem:[#allocation2 + $0xa0] sm:$0xff] }
 0x159   : > { %989 = vst.msk [vmem:[#allocation2 + $0xf0] sm:$0xff] %vm3478_vm4, %v975_v8  ;;  %v962_v62 = vpop.permute.xlu0 %961  ;;  %v960_v63 = vpop.permute.xlu1 %959  ;;  %1684 = vmatprep.subr.bf16.mxu0 %v2509_v25  ;;  %v2369_v3 = vcombine.high %v1199_v6, %v3257_v17 }
 0x15a   : > { %901 = vst.msk [vmem:[#allocation2 + $0xc8] sm:$0xff] %vm3421_vm7, %v890_v12  ;;  %v969_v4 = vrot.slane %v962_v62, 4  ;;  %v968_v5 = vrot.slane %v960_v63, 4 }
 0x15b   : > { %1685 = vmatpush1.bf16.msra.mxu0 %v2511_v0 }
 0x15c   : > { %v974_v9 = vsel %vm624_vm1, %v962_v62, %v969_v4  ;;  %v973_v13 = vsel %vm624_vm1, %v960_v63, %v968_v5  ;;  %vm3835_vm1 = vcmask 908288   ;;  %v1203_v53 = vld [vmem:[#allocation2 + $0xc0] sm:$0xff] }
 0x15d   : > { %v2512_v47 = vld [vmem:[#allocation2 + $0x4] ss:$8 sps:$4 sm:$0xff]   ;;  %v2514_v14 = vld [vmem:[#allocation2] ss:$8 sps:$4 sm:$0xff]   ;;  %988 = vst.msk [vmem:[#allocation2 + $0xe8] sm:$0xff] %vm3478_vm4, %v974_v9  ;;  %987 = vst.msk [vmem:[#allocation2 + $0xe0] sm:$0xff] %vm3478_vm4, %v973_v13  ;;  %v1122_v16 = vpop.permute.xlu0 %1121  ;;  %v848_v19 = vpop.permute.xlu1 %847 }
 0x15e   : > { %v1127_v2 = vrot.slane %v1122_v16, 4  ;;  %v849_v59 = vrot.slane %v848_v19, 4  ;;  %1686 = vmatprep.subr.bf16.mxu0 %v2512_v47  ;;  %vm3837_vm4 = vmmov %vm3836_vm0 }
 0x15f   : > { %1687 = vmatpush1.bf16.msra.mxu0 %v2514_v14  ;;  %vm3838_vm3 = vmmov %vm3835_vm1  ;;  %v2368_v14 = vcombine.low %v1199_v6, %v3257_v17  ;;  %v2536_v17 = vld [vmem:[#allocation2 + $0x90] ss:$8 sps:$4 sm:$0xff]  }
 0x160   : > { %v1132_v20 = vsel %vm3835_vm1, %v1122_v16, %v1127_v2  ;;  %v850_v23 = vsel %vm3836_vm0, %v848_v19, %v849_v59  ;;  %v2515_v27 = vld [vmem:[#allocation2 + $0xf4] ss:$8 sps:$4 sm:$0xff]   ;;  %v2517_v36 = vld [vmem:[#allocation2 + $0xf0] ss:$8 sps:$4 sm:$0xff]   ;;  %vm3844_vm14 = vmmov %vm3835_vm1 }
 0x161   : > { %1146 = vst.msk [vmem:[#allocation2 + $0x140] sm:$0x33] %vm3501_vm6, %v1132_v20  ;;  %v877_v50 = vpop.permute.xlu0 %876  ;;  %v1075_v7 = vpop.permute.xlu1 %1074  ;;  %1688 = vmatprep.subr.bf16.mxu0 %v2515_v27  ;;  %v1204_v61 = vld [vmem:[#allocation2 + $0xc8] sm:$0xff] }
 0x162   : > { %855 = vst.msk [vmem:[#allocation2 + $0xb0] sm:$0xcc] %vm854_vm2, %v850_v23  ;;  %v884_v28 = vrot.slane %v877_v50, 4  ;;  %v1076_v33 = vrot.slane %v1075_v7, 4  ;;  %v2525_v26 = vld [vmem:[#allocation2 + $0xc4] ss:$8 sps:$4 sm:$0xff]   ;;  %v2372_v31 = vcombine.low %v1203_v53, %v1204_v61 }
 0x163   : > { %1689 = vmatpush2.bf16.msra.mxu0 %v2517_v36  ;;  %v2575_v61 = vld [vmem:[%s3796_s3 + $0xac] ss:$12 sps:$4 sm:$0xff]  }
 0x164   : > { %v888_v42 = vsel %vm3837_vm4, %v877_v50, %v884_v28  ;;  %v1077_v32 = vsel %vm3838_vm3, %v1075_v7, %v1076_v33  ;;  %v2518_v18 = vld [vmem:[#allocation2 + $0xe4] ss:$8 sps:$4 sm:$0xff]   ;;  %v2520_v40 = vld [vmem:[#allocation2 + $0xe0] ss:$8 sps:$4 sm:$0xff]  }
 0x165   : > { %899 = vst.msk [vmem:[#allocation2 + $0xb8] sm:$0xff] %vm3421_vm7, %v888_v42  ;;  %v1114_v38 = vpop.permute.xlu0 %1113  ;;  %v1118_v39 = vpop.permute.xlu1 %1117  ;;  %1690 = vmatprep.subr.bf16.mxu0 %v2518_v18  ;;  %vm1054_vm7 = vcmask 916484  }
 0x166   : > { %1081 = vst.msk [vmem:[#allocation2 + $0x120] sm:$0x33] %vm3501_vm6, %v1077_v32  ;;  %v1123_v41 = vrot.slane %v1114_v38, 4  ;;  %v1125_v45 = vrot.slane %v1118_v39, 4  ;;  %vm3843_vm6 = vmmov %vm3835_vm1 }
 0x167   : > { %1691 = vmatpush2.bf16.msra.mxu0 %v2520_v40  ;;  %vm3533_vm2 = vmor %vm1054_vm7, %vm896_vm10  ;;  %vm3848_vm10 = vcmask 7168  }
 0x168   : > { %v1128_v48 = vsel %vm3843_vm6, %v1114_v38, %v1123_v41  ;;  %v1130_v51 = vsel %vm3844_vm14, %v1118_v39, %v1125_v45  ;;  %1692 = vmatprep.subr.bf16.mxu0 %v2521_v46  ;;  %v1219_v30 = vld [vmem:[#allocation2 + $0x140] sm:$0x33]  ;;  %vm3849_vm0 = vmmov %vm3848_vm10  ;;  %v2551_v38 = vld [vmem:[%s3796_s3 + $0x1c] ss:$12 sps:$4 sm:$0xff]  }
 0x169   : > { %1140 = vst.msk [vmem:[#allocation2 + $0x120] sm:$0xcc] %vm3517_vm5, %v1128_v48  ;;  %v1120_v52 = vpop.permute.xlu0 %1119  ;;  %v1041_v54 = vpop.permute.xlu1 %1040  ;;  %v2389_v21 = vcombine.high %v1219_v30, %v1219_v30  ;;  %v2388_v55 = vcombine.low %v1219_v30, %v1219_v30  ;;  %v1201_v0 = vld [vmem:[#allocation2 + $0xb0] sm:$0xff]  ;;  %v2559_v48 = vld [vmem:[%s3796_s3 + $0x4c] ss:$12 sps:$4 sm:$0xff]  }
 0x16a   : > { %1144 = vst.msk [vmem:[#allocation2 + $0x130] sm:$0xff] %vm3522_vm15, %v1130_v51  ;;  %v1126_v57 = vrot.slane %v1120_v52, 4  ;;  %v1045_v60 = vrot.slane %v1041_v54, 4  ;;  %v2550_v41 = vld [vmem:[%s3796_s3 + $0x8] ss:$12 sps:$4 sm:$0xff]  }
 0x16b   : > { %2390 = vmatprep.subr.msk.bf16.mxu1 %vm471_vm11, %v2389_v21  ;;  %1693 = vmatpush2.bf16.msra.mxu0 %v2374_v34  ;;  %v1667_v35 = vsel %vm471_vm11, %v2388_v55, 0  ;;  %vm3847_vm11 = vmmov %vm3835_vm1  ;;  %v2555_v45 = vld [vmem:[%s3796_s3 + $0x34] ss:$12 sps:$4 sm:$0xff]   ;;  %v2557_v46 = vld [vmem:[%s3796_s3 + $0x30] ss:$12 sps:$4 sm:$0xff]  }
 0x16c   : > { %v1131_v43 = vsel %vm3835_vm1, %v1120_v52, %v1126_v57  ;;  %v1049_v49 = vsel %vm539_vm13, %v1041_v54, %v1045_v60  ;;  %1792 = vmatpush1.bf16.msra.mxu1 %v1667_v35  ;;  %1694 = vmatprep.subr.bf16.mxu0 %v2525_v26  ;;  %v1202_v12 = vld [vmem:[#allocation2 + $0xb8] sm:$0xff]  ;;  %v2563_v30 = vld [vmem:[%s3796_s3 + $0x64] ss:$12 sps:$4 sm:$0xff]   ;;  %v2565_v54 = vld [vmem:[%s3796_s3 + $0x60] ss:$12 sps:$4 sm:$0xff]  }
 0x16d   : > { %1145 = vst.msk [vmem:[#allocation2 + $0x138] sm:$0xff] %vm3522_vm15, %v1131_v43  ;;  %v1039_v56 = vpop.permute.xlu0 %1038  ;;  %v1116_v22 = vpop.permute.xlu1 %1115  ;;  %v2527_v25 = vld [vmem:[#allocation2 + $0xb4] ss:$8 sps:$4 sm:$0xff]   ;;  %v2370_v9 = vcombine.low %v1201_v0, %v1202_v12  ;;  %v2558_v51 = vld [vmem:[%s3796_s3 + $0x38] ss:$12 sps:$4 sm:$0xff]  }
 0x16e   : > { %1059 = vst.msk [vmem:[#allocation2 + $0x118] sm:$0xff] %vm3533_vm2, %v1049_v49  ;;  %v1044_v24 = vrot.slane %v1039_v56, 4  ;;  %v1124_v8 = vrot.slane %v1116_v22, 4  ;;  %v2562_v52 = vld [vmem:[%s3796_s3 + $0x50] ss:$12 sps:$4 sm:$0xff]  }
 0x16f   : > { %1695 = vmatpush2.bf16.msra.mxu0 %v2372_v31  ;;  %v2567_v21 = vld [vmem:[%s3796_s3 + $0x7c] ss:$12 sps:$4 sm:$0xff]   ;;  %v2569_v55 = vld [vmem:[%s3796_s3 + $0x78] ss:$12 sps:$4 sm:$0xff]   ;;  %v2571_v57 = vld [vmem:[%s3796_s3 + $0x94] ss:$12 sps:$4 sm:$0xff]  }
 0x170   : > { %v1048_v62 = vsel %vm539_vm13, %v1039_v56, %v1044_v24  ;;  %v1129_v63 = vsel %vm3847_vm11, %v1116_v22, %v1124_v8  ;;  %1696 = vmatprep.subr.bf16.mxu0 %v2527_v25  ;;  %v2566_v34 = vld [vmem:[%s3796_s3 + $0x68] ss:$12 sps:$4 sm:$0xff]   ;;  %v2573_v60 = vld [vmem:[%s3796_s3 + $0x90] ss:$12 sps:$4 sm:$0xff]   ;;  %v2574_v26 = vld [vmem:[%s3796_s3 + $0x98] ss:$12 sps:$4 sm:$0xff]  }
 0x171   : > { %1058 = vst.msk [vmem:[#allocation2 + $0x110] sm:$0xff] %vm3533_vm2, %v1048_v62  ;;  %v759_v4 = vpop.permute.xlu0 %758  ;;  %v761_v5 = vpop.permute.xlu1 %760  ;;  %v2577_v35 = vld [vmem:[%s3796_s3 + $0xa8] ss:$12 sps:$4 sm:$0xff]   ;;  %v2578_v43 = vld [vmem:[%s3796_s3 + $0xb0] ss:$12 sps:$4 sm:$0xff]  }
 0x172   : > { %1143 = vst.msk [vmem:[#allocation2 + $0x128] sm:$0xff] %vm3522_vm15, %v1129_v63  ;;  %v764_v13 = vrot.slane %v759_v4, 4  ;;  %v765_v47 = vrot.slane %v761_v5, 4 }
 0x173   : > { %1697 = vmatpush2.bf16.msra.mxu0 %v2370_v9 }
 0x174   : > { %v768_v16 = vsel %vm3848_vm10, %v764_v13, %v759_v4  ;;  %v769_v19 = vsel %vm3849_vm0, %v765_v47, %v761_v5  ;;  %1698 = vmatprep.subr.bf16.mxu0 %v2369_v3  ;;  %v2529_v2 = vld [vmem:[#allocation2 + $0x134] ss:$8 sps:$4 sm:$0xff]   ;;  %v2531_v59 = vld [vmem:[#allocation2 + $0x130] ss:$8 sps:$4 sm:$0xff]  }
 0x175   : > { %778 = vst.msk [vmem:[#allocation2 + $0x80] sm:$0xff] %vm3328_vm8, %v768_v16  ;;  %779 = vst.msk [vmem:[#allocation2 + $0x88] sm:$0xff] %vm3328_vm8, %v769_v19  ;;  %v1035_v20 = vpop.permute.xlu0 %1034  ;;  %v1037_v23 = vpop.permute.xlu1 %1036  ;;  %1793 = vmatprep.subr.bf16.mxu1 %v2529_v2 }
 0x176   : > { %v1042_v27 = vrot.slane %v1035_v20, 4  ;;  %v1043_v36 = vrot.slane %v1037_v23, 4  ;;  %1794 = vmatpush1.bf16.msra.mxu1 %v2531_v59 }
 0x177   : > { %1699 = vmatpush2.bf16.msra.mxu0 %v2368_v14 }
 0x178   : > { %v1046_v50 = vsel %vm539_vm13, %v1035_v20, %v1042_v27  ;;  %v1047_v7 = vsel %vm539_vm13, %v1037_v23, %v1043_v36  ;;  %1700 = vmatprep.subr.bf16.mxu0 %v2532_v15  ;;  %v2538_v10 = vld [vmem:[#allocation2 + $0x114] ss:$8 sps:$4 sm:$0xff]   ;;  %v2543_v18 = vld [vmem:[#allocation2 + $0x110] ss:$8 sps:$4 sm:$0xff]   ;;  %vm1641_vm13 = vcmask 556032  }
 0x179   : > { %v2534_v28 = vld [vmem:[#allocation2 + $0x124] ss:$8 sps:$4 sm:$0xff]   ;;  %v2537_v33 = vld [vmem:[#allocation2 + $0x120] ss:$8 sps:$4 sm:$0xff]   ;;  %1056 = vst.msk [vmem:[#allocation2 + $0x100] sm:$0xff] %vm3533_vm2, %v1046_v50  ;;  %1057 = vst.msk [vmem:[#allocation2 + $0x108] sm:$0xff] %vm3533_vm2, %v1047_v7 }
 0x17a   : > { %1795 = vmatprep.subr.bf16.mxu1 %v2534_v28 }
 0x17b   : > { %1701 = vmatpush2.bf16.msra.mxu0 %v2536_v17  ;;  %1796 = vmatpush1.bf16.msra.mxu1 %v2537_v33 }
 0x17c   : > { %1797 = vmatprep.subr.bf16.mxu1 %v2538_v10  ;;  %v2540_v42 = vld [vmem:[#allocation2 + $0x84] ss:$8 sps:$4 sm:$0xff]   ;;  %v2542_v32 = vld [vmem:[#allocation2 + $0x80] ss:$8 sps:$4 sm:$0xff]  }
 0x17d   : > { %1702 = vmatprep.subr.bf16.mxu0 %v2540_v42 }
 0x17f   : > { %1703 = vmatpush2.bf16.msra.mxu0 %v2542_v32  ;;  %1798 = vmatpush1.bf16.msra.mxu1 %v2543_v18 }
 0x180   : > { %v2547_v39 = vld [vmem:[#allocation2 + $0x104] ss:$8 sps:$4 sm:$0xff]   ;;  %v2549_v40 = vld [vmem:[#allocation2 + $0x100] ss:$8 sps:$4 sm:$0xff]  }
 0x181   : > { %1799 = vmatprep.subr.bf16.mxu1 %v2547_v39 }
 0x182   : > { %1705 = vmatmul.mubr.bf16.vlgmr.msra.gmra.mxu0 %v2544_v37  ;;  %v1239_v56 = vpop.permute.xlu0 %1238  ;;  %v1244_v22 = vpop.permute.xlu1 %1243 }
 0x183   : > { %1800 = vmatpush1.bf16.msra.mxu1 %v2549_v40  ;;  %1714 = vmatprep.mubr.bf16.mxu0 %v2551_v38 }
 0x186   : > { %2391 = vmatmul.mubr.msk.bf16.vlgmr.msra.gmra.mxu1 %vm1641_vm13, %v2550_v41  ;;  %v1249_v25 = vpop.permute.xlu1 %1248  ;;  %v1254_v36 = vpop.permute.xlu0 %1253 }
 0x187   : > { %1827 = vmatprep.mubr.bf16.mxu1 %v2799_v1 }
 0x18a   : > { %1715 = vmatmul.mubr.bf16.gmra.mxu0 %v2553_v44 }
 0x18b   : > { %1724 = vmatprep.mubr.bf16.mxu0 %v2555_v45 }
 0x18e   : > { %2392 = vmatmul.mubr.msk.bf16.gmra.mxu1 %vm1641_vm13, %v2554_v11 }
 0x18f   : > { %1837 = vmatprep.mubr.bf16.mxu1 %v2799_v1 }
 0x192   : > { %1725 = vmatmul.mubr.bf16.gmra.mxu0 %v2557_v46 }
 0x193   : > { %1734 = vmatprep.mubr.bf16.mxu0 %v2559_v48 }
 0x196   : > { %2393 = vmatmul.mubr.msk.bf16.gmra.mxu1 %vm1641_vm13, %v2558_v51 }
 0x197   : > { %1847 = vmatprep.mubr.bf16.mxu1 %v2799_v1 }
 0x19a   : > { %1735 = vmatmul.mubr.bf16.gmra.mxu0 %v2561_v29 }
 0x19b   : > { %1744 = vmatprep.mubr.bf16.mxu0 %v2563_v30 }
 0x19e   : > { %2394 = vmatmul.mubr.msk.bf16.gmra.mxu1 %vm1641_vm13, %v2562_v52 }
 0x19f   : > { %1857 = vmatprep.mubr.bf16.mxu1 %v2799_v1 }
 0x1a0   : > { %v1264_v11 = vpop.permute.xlu0 %1263 }
 0x1a2   : > { %1745 = vmatmul.mubr.bf16.gmra.mxu0 %v2565_v54 }
 0x1a3   : > { %1754 = vmatprep.mubr.bf16.mxu0 %v2567_v21 }
 0x1a5   : > { %v1259_v50 = vpop.permute.xlu1 %1258 }
 0x1a6   : > { %2395 = vmatmul.mubr.msk.bf16.gmra.mxu1 %vm1641_vm13, %v2566_v34 }
 0x1a7   : > { %1867 = vmatprep.mubr.bf16.mxu1 %v2799_v1 }
 0x1aa   : > { %1755 = vmatmul.mubr.bf16.gmra.mxu0 %v2569_v55 }
 0x1ab   : > { %1764 = vmatprep.mubr.bf16.mxu0 %v2571_v57 }
 0x1ac   : > { %v1269_v52 = vpop.permute.xlu1 %1268 }
 0x1ae   : > { %2396 = vmatmul.mubr.msk.bf16.gmra.mxu1 %vm1641_vm13, %v2570_v58 }
 0x1af   : > { %1877 = vmatprep.mubr.bf16.mxu1 %v2799_v1 }
 0x1b2   : > { %1765 = vmatmul.mubr.bf16.gmra.mxu0 %v2573_v60 }
 0x1b3   : > { %1774 = vmatprep.mubr.bf16.mxu0 %v2575_v61 }
 0x1b6   : > { %2397 = vmatmul.mubr.msk.bf16.gmra.mxu1 %vm1641_vm13, %v2574_v26 }
 0x1b7   : > { %1887 = vmatprep.mubr.bf16.mxu1 %v2799_v1 }
 0x1ba   : > { %1775 = vmatmul.mubr.bf16.gmra.mxu0 %v2577_v35 }
 0x1be   : > { %2398 = vmatmul.mubr.msk.bf16.gmra.mxu1 %vm1641_vm13, %v2578_v43 }
 0x242   : > { %v1706_v49 = vpop.f32.mrf.mxu0 }
 0x243   : > { %v1707_v24 = vadd.f32 %v1706_v49, %v1239_v56 }
 0x244   : > { %v1708_v53 = vpop.f32.mrf.mxu0 }
 0x245   : > { %v1709_v1 = vadd.f32 %v1708_v53, %v1239_v56 }
 0x246   : > { %v1710_v31 = vpop.f32.mrf.mxu0  ;;  %v1819_v6 = vpop.f32.mrf.mxu1 }
 0x247   : > { %v1820_v0 = vadd.f32 %v1819_v6, %v1707_v24  ;;  %v1711_v3 = vadd.f32 %v1710_v31, %v1244_v22 }
 0x248   : > { %v1712_v8 = vpop.f32.mrf.mxu0  ;;  %v1821_v12 = vpop.f32.mrf.mxu1 }
 0x249   : > { %v1822_v9 = vadd.f32 %v1821_v12, %v1709_v1  ;;  %v1713_v47 = vadd.f32 %v1712_v8, %v1244_v22  ;;  %v2399_v19 = vmul.f32 -1.442695, %v1820_v0 }
 0x24a   : > { %v1716_v62 = vpop.f32.mrf.mxu0  ;;  %v1823_v63 = vpop.f32.mrf.mxu1 }
 0x24b   : > { %v1717_v13 = vadd.f32 %v1716_v62, %v1249_v25  ;;  %v1824_v14 = vadd.f32 %v1823_v63, %v1711_v3  ;;  %v2400_v27 = vmul.f32 -1.442695, %v1822_v9  ;;  %2579 = vpow2.f32 %v2399_v19  ;;  %v1274_v9 = vpop.permute.xlu0 %1273 }
 0x24c   : > { %v1718_v4 = vpop.f32.mrf.mxu0  ;;  %v1825_v5 = vpop.f32.mrf.mxu1 }
 0x24d   : > { %v1826_v2 = vadd.f32 %v1825_v5, %v1713_v47  ;;  %v1719_v59 = vadd.f32 %v1718_v4, %v1249_v25  ;;  %v2401_v7 = vmul.f32 -1.442695, %v1824_v14  ;;  %2581 = vpow2.f32 %v2400_v27 }
 0x24e   : > { %v1720_v15 = vpop.f32.mrf.mxu0  ;;  %v1829_v16 = vpop.f32.mrf.mxu1 }
 0x24f   : > { %v1830_v17 = vadd.f32 %v1829_v16, %v1717_v13  ;;  %v1721_v28 = vadd.f32 %v1720_v15, %v1254_v36  ;;  %v2402_v18 = vmul.f32 -1.442695, %v1826_v2  ;;  %2583 = vpow2.f32 %v2401_v7 }
 0x250   : > { %v1722_v20 = vpop.f32.mrf.mxu0  ;;  %v1831_v23 = vpop.f32.mrf.mxu1 }
 0x251   : > { %v1832_v33 = vadd.f32 %v1831_v23, %v1719_v59  ;;  %v2403_v40 = vmul.f32 -1.442695, %v1830_v17  ;;  %2585 = vpow2.f32 %v2402_v18  ;;  %v1723_v61 = vadd.f32 %v1722_v20, %v1254_v36  ;;  %v1279_v59 = vpop.permute.xlu1 %1278 }
 0x252   : > { %v1726_v10 = vpop.f32.mrf.mxu0  ;;  %v1833_v42 = vpop.f32.mrf.mxu1 }
 0x253   : > { %v1727_v32 = vadd.f32 %v1726_v10, %v1259_v50  ;;  %v1834_v37 = vadd.f32 %v1833_v42, %v1721_v28  ;;  %v2404_v41 = vmul.f32 -1.442695, %v1832_v33  ;;  %2587 = vpow2.f32 %v2403_v40 }
 0x254   : > { %v1728_v38 = vpop.f32.mrf.mxu0  ;;  %v1835_v39 = vpop.f32.mrf.mxu1 }
 0x255   : > { %v2405_v48 = vmul.f32 -1.442695, %v1834_v37  ;;  %v1729_v51 = vadd.f32 %v1728_v38, %v1259_v50  ;;  %2589 = vpow2.f32 %v2404_v41  ;;  %v1836_v53 = vadd.f32 %v1835_v39, %v1723_v61 }
 0x256   : > { %v1730_v44 = vpop.f32.mrf.mxu0  ;;  %v1839_v45 = vpop.f32.mrf.mxu1 }
 0x257   : > { %v1840_v46 = vadd.f32 %v1839_v45, %v1727_v32  ;;  %v1731_v54 = vadd.f32 %v1730_v44, %v1264_v11  ;;  %2591 = vpow2.f32 %v2405_v48  ;;  %v2406_v0 = vmul.f32 -1.442695, %v1836_v53 }
 0x258   : > { %v1732_v29 = vpop.f32.mrf.mxu0  ;;  %v1841_v30 = vpop.f32.mrf.mxu1 }
 0x259   : > { %v1842_v21 = vadd.f32 %v1841_v30, %v1729_v51  ;;  %v2407_v57 = vmul.f32 -1.442695, %v1840_v46  ;;  %v1733_v26 = vadd.f32 %v1732_v29, %v1264_v11  ;;  %v2580_v25 = vpop.eup %2579  ;;  %v1284_v46 = vpop.permute.xlu0 %1283 }
 0x25a   : > { %v1736_v34 = vpop.f32.mrf.mxu0  ;;  %v1843_v55 = vpop.f32.mrf.mxu1  ;;  %v1922_v14 = vadd.f32 1.0, %v2580_v25 }
 0x25b   : > { %v1737_v58 = vadd.f32 %v1736_v34, %v1269_v52  ;;  %v1844_v60 = vadd.f32 %v1843_v55, %v1731_v54  ;;  %v2408_v49 = vmul.f32 -1.442695, %v1842_v21  ;;  %2593 = vpow2.f32 %v2407_v57  ;;  %v2582_v1 = vpop.eup %2581 }
 0x25c   : > { %v1738_v35 = vpop.f32.mrf.mxu0  ;;  %v1845_v43 = vpop.f32.mrf.mxu1  ;;  %v1923_v2 = vadd.f32 1.0, %v2582_v1 }
 0x25d   : > { %v1846_v56 = vadd.f32 %v1845_v43, %v1733_v26  ;;  %v2409_v6 = vmul.f32 -1.442695, %v1844_v60  ;;  %2595 = vpow2.f32 %v2408_v49  ;;  %v1739_v62 = vadd.f32 %v1738_v35, %v1269_v52  ;;  %v2584_v5 = vpop.eup %2583  ;;  %v1289_v43 = vpop.permute.xlu1 %1288 }
 0x25e   : > { %v1740_v22 = vpop.f32.mrf.mxu0  ;;  %v1849_v31 = vpop.f32.mrf.mxu1  ;;  %v1924_v27 = vadd.f32 1.0, %v2584_v5 }
 0x25f   : > { %v1850_v24 = vadd.f32 %v1849_v31, %v1737_v58  ;;  %v2410_v63 = vmul.f32 -1.442695, %v1846_v56  ;;  %2597 = vpow2.f32 %v2409_v6  ;;  %v2586_v19 = vpop.eup %2585  ;;  %v1741_v20 = vadd.f32 %v1740_v22, %v1274_v9 }
 0x260   : > { %v1742_v8 = vpop.f32.mrf.mxu0  ;;  %v1851_v12 = vpop.f32.mrf.mxu1  ;;  %v1925_v42 = vadd.f32 1.0, %v2586_v19 }
 0x261   : > { %v2411_v13 = vmul.f32 -1.442695, %v1850_v24  ;;  %v1852_v47 = vadd.f32 %v1851_v12, %v1739_v62  ;;  %2599 = vpow2.f32 %v2410_v63  ;;  %v2588_v23 = vpop.eup %2587  ;;  %v1743_v28 = vadd.f32 %v1742_v8, %v1274_v9 }
 0x262   : > { %v1746_v3 = vpop.f32.mrf.mxu0  ;;  %v1853_v4 = vpop.f32.mrf.mxu1  ;;  %2601 = vpow2.f32 %v2406_v0  ;;  %v1926_v38 = vadd.f32 1.0, %v2588_v23 }
 0x263   : > { %v1747_v36 = vadd.f32 %v1746_v3, %v1279_v59  ;;  %v2590_v7 = vpop.eup %2589  ;;  %2603 = vpow2.f32 %v2411_v13  ;;  %v2412_v33 = vmul.f32 -1.442695, %v1852_v47  ;;  %v1854_v10 = vadd.f32 %v1853_v4, %v1741_v20  ;;  %v1294_v3 = vpop.permute.xlu0 %1293 }
 0x264   : > { %v1748_v15 = vpop.f32.mrf.mxu0  ;;  %v1855_v16 = vpop.f32.mrf.mxu1  ;;  %2605 = vrcp.f32 %v1922_v14  ;;  %v1927_v40 = vadd.f32 1.0, %v2590_v7 }
 0x265   : > { %v2592_v37 = vpop.eup %2591  ;;  %2607 = vrcp.f32 %v1923_v2  ;;  %v1856_v39 = vadd.f32 %v1855_v16, %v1743_v28  ;;  %v1749_v41 = vadd.f32 %v1748_v15, %v1279_v59  ;;  %v2413_v48 = vmul.f32 -1.442695, %v1854_v10  ;;  %v1299_v16 = vpop.permute.xlu1 %1298 }
 0x266   : > { %v1750_v17 = vpop.f32.mrf.mxu0  ;;  %v1859_v50 = vpop.f32.mrf.mxu1  ;;  %2609 = vrcp.f32 %v1924_v27  ;;  %v1928_v29 = vadd.f32 1.0, %v2592_v37 }
 0x267   : > { %v1860_v44 = vadd.f32 %v1859_v50, %v1747_v36  ;;  %2611 = vpow2.f32 %v2412_v33  ;;  %v1751_v30 = vadd.f32 %v1750_v17, %v1284_v46  ;;  %v2414_v34 = vmul.f32 -1.442695, %v1856_v39 }
 0x268   : > { %v1752_v32 = vpop.f32.mrf.mxu0  ;;  %v1861_v18 = vpop.f32.mrf.mxu1  ;;  %2613 = vrcp.f32 %v1925_v42 }
 0x269   : > { %v2594_v51 = vpop.eup %2593  ;;  %v1862_v52 = vadd.f32 %v1861_v18, %v1749_v41  ;;  %2615 = vrcp.f32 %v1926_v38  ;;  %v2415_v57 = vmul.f32 -1.442695, %v1860_v44  ;;  %v1753_v58 = vadd.f32 %v1752_v32, %v1284_v46  ;;  %v1304_v18 = vpop.permute.xlu0 %1303 }
 0x26a   : > { %v1756_v45 = vpop.f32.mrf.mxu0  ;;  %v1863_v11 = vpop.f32.mrf.mxu1  ;;  %2617 = vrcp.f32 %v1927_v40  ;;  %v1970_v35 = vadd.f32 1.0, %v2594_v51 }
 0x26b   : > { %v2596_v55 = vpop.eup %2595  ;;  %v1864_v60 = vadd.f32 %v1863_v11, %v1751_v30  ;;  %2619 = vpow2.f32 %v2413_v48  ;;  %v2416_v53 = vmul.f32 -1.442695, %v1862_v52  ;;  %v1757_v56 = vadd.f32 %v1756_v45, %v1289_v43 }
 0x26c   : > { %v1758_v54 = vpop.f32.mrf.mxu0  ;;  %v1865_v21 = vpop.f32.mrf.mxu1  ;;  %2621 = vrcp.f32 %v1928_v29  ;;  %v1971_v24 = vadd.f32 1.0, %v2596_v55 }
 0x26d   : > { %v2598_v49 = vpop.eup %2597  ;;  %v1866_v22 = vadd.f32 %v1865_v21, %v1753_v58  ;;  %2623 = vpow2.f32 %v2414_v34  ;;  %v2417_v12 = vmul.f32 -1.442695, %v1864_v60  ;;  %v1759_v4 = vadd.f32 %v1758_v54, %v1289_v43  ;;  %v1309_v34 = vpop.permute.xlu1 %1308 }
 0x26e   : > { %v1760_v61 = vpop.f32.mrf.mxu0  ;;  %v1869_v26 = vpop.f32.mrf.mxu1  ;;  %2625 = vpow2.f32 %v2415_v57  ;;  %v1972_v0 = vadd.f32 1.0, %v2598_v49 }
 0x26f   : > { %v2600_v8 = vpop.eup %2599  ;;  %v1870_v25 = vadd.f32 %v1869_v26, %v1757_v56  ;;  %2627 = vrcp.f32 %v1970_v35  ;;  %v2418_v9 = vmul.f32 -1.442695, %v1866_v22  ;;  %v1761_v50 = vadd.f32 %v1760_v61, %v1294_v3 }
 0x270   : > { %v1762_v31 = vpop.f32.mrf.mxu0  ;;  %v1871_v6 = vpop.f32.mrf.mxu1  ;;  %2629 = vpow2.f32 %v2416_v53  ;;  %v1973_v15 = vadd.f32 1.0, %v2600_v8 }
 0x271   : > { %v3649_v1 = vpop.eup %2601  ;;  %2631 = vrcp.f32 %v1971_v24  ;;  %v1872_v19 = vadd.f32 %v1871_v6, %v1759_v4  ;;  %v2419_v59 = vmul.f32 -1.442695, %v1870_v25  ;;  %v1763_v48 = vadd.f32 %v1762_v31, %v1294_v3  ;;  %v1314_v24 = vpop.permute.xlu0 %1313 }
 0x272   : > { %v1766_v62 = vpop.f32.mrf.mxu0  ;;  %v1873_v63 = vpop.f32.mrf.mxu1  ;;  %2633 = vpow2.f32 %v2417_v12 }
 0x273   : > { %v2604_v5 = vpop.eup %2603  ;;  %v1767_v20 = vadd.f32 %v1766_v62, %v1299_v16  ;;  %2635 = vrcp.f32 %v1972_v0  ;;  %v2420_v37 = vmul.f32 -1.442695, %v1872_v19  ;;  %v1874_v38 = vadd.f32 %v1873_v63, %v1761_v50 }
 0x274   : > { %v1768_v13 = vpop.f32.mrf.mxu0  ;;  %v1875_v47 = vpop.f32.mrf.mxu1  ;;  %v1974_v17 = vadd.f32 1.0, %v2604_v5 }
 0x275   : > { %v3651_v14 = vpop.eup %2605  ;;  %2637 = vpow2.f32 %v2418_v9  ;;  %v1769_v28 = vadd.f32 %v1768_v13, %v1299_v16  ;;  %v2421_v55 = vmul.f32 -1.442695, %v1874_v38  ;;  %v1876_v57 = vadd.f32 %v1875_v47, %v1763_v48 }
 0x276   : > { %v3653_v2 = vpop.eup %2607  ;;  %v1770_v23 = vpop.f32.mrf.mxu0  ;;  %2639 = vrcp.f32 %v1973_v15  ;;  %v1929_v16 = vadd.f32 1.0, %v3649_v1 }
 0x277   : > { %v1879_v27 = vpop.f32.mrf.mxu1  ;;  %v3655_v36 = vpop.eup %2609  ;;  %2641 = vpow2.f32 %v2419_v59  ;;  %v1771_v40 = vadd.f32 %v1770_v23, %v1304_v18  ;;  %v2422_v8 = vmul.f32 -1.442695, %v1876_v57  ;;  %v2050_v23 = vld [vmem:[%s3670_s10] sm:$0xff] }
 0x278   : > { %v2612_v7 = vpop.eup %2611  ;;  %v1880_v33 = vadd.f32 %v1879_v27, %v1767_v20  ;;  %v1772_v10 = vpop.f32.mrf.mxu0  ;;  %2643 = vrcp.f32 %v1974_v17 }
 0x279   : > { %v1881_v42 = vpop.f32.mrf.mxu1  ;;  %v3657_v32 = vpop.eup %2613  ;;  %v1975_v46 = vadd.f32 1.0, %v2612_v7  ;;  %v1773_v29 = vadd.f32 %v1772_v10, %v1304_v18  ;;  %v2051_v7 = vld [vmem:[%s3670_s10 + $0x8] sm:$0xff]  ;;  %v2052_v18 = vld [vmem:[%s3670_s10 + $0x10] sm:$0xff] }
 0x27a   : > { %v3659_v39 = vpop.eup %2615  ;;  %v1882_v41 = vadd.f32 %v1881_v42, %v1769_v28  ;;  %v1776_v44 = vpop.f32.mrf.mxu0  ;;  %2645 = vtanh.f32 %v1880_v33 }
 0x27b   : > { %v1883_v45 = vpop.f32.mrf.mxu1  ;;  %v3661_v11 = vpop.eup %2617  ;;  %2647 = vpow2.f32 %v2420_v37  ;;  %v1777_v60 = vadd.f32 %v1776_v44, %v1309_v34 }
 0x27c   : > { %v2620_v51 = vpop.eup %2619  ;;  %v1884_v30 = vadd.f32 %v1883_v45, %v1771_v40  ;;  %v1778_v52 = vpop.f32.mrf.mxu0  ;;  %2649 = vtanh.f32 %v1882_v41 }
 0x27d   : > { %v1885_v54 = vpop.f32.mrf.mxu1  ;;  %v3663_v21 = vpop.eup %2621  ;;  %2651 = vrcp.f32 %v1975_v46  ;;  %v1976_v49 = vadd.f32 1.0, %v2620_v51  ;;  %v1779_v56 = vadd.f32 %v1778_v52, %v1309_v34  ;;  %v2053_v46 = vld [vmem:[%s3670_s10 + $0x18] sm:$0xff]  ;;  %v2054_v52 = vld [vmem:[%s3670_s10 + $0x20] sm:$0xff] }
 0x27e   : > { %v2624_v58 = vpop.eup %2623  ;;  %v1886_v61 = vadd.f32 %v1885_v54, %v1773_v29  ;;  %v1780_v26 = vpop.f32.mrf.mxu0  ;;  %2653 = vtanh.f32 %v1884_v30 }
 0x27f   : > { %v1889_v35 = vpop.f32.mrf.mxu1  ;;  %v2626_v43 = vpop.eup %2625  ;;  %2655 = vpow2.f32 %v2421_v55  ;;  %v1781_v62 = vadd.f32 %v1780_v26, %v1314_v24  ;;  %v1977_v4 = vadd.f32 1.0, %v2624_v58 }
 0x280   : > { %v2628_v53 = vpop.eup %2627  ;;  %v1890_v22 = vadd.f32 %v1889_v35, %v1777_v60  ;;  %v1782_v12 = vpop.f32.mrf.mxu0  ;;  %2657 = vtanh.f32 %v1886_v61  ;;  %v2018_v50 = vadd.f32 1.0, %v2626_v43  ;;  %v2055_v61 = vld [vmem:[%s3670_s10 + $0x28] sm:$0xff] }
 0x281   : > { %v1891_v31 = vpop.f32.mrf.mxu1  ;;  %v2630_v6 = vpop.eup %2629  ;;  %2659 = vrcp.f32 %v1976_v49  ;;  %v1783_v9 = vadd.f32 %v1782_v12, %v1314_v24  ;;  %v2058_v28 = vmul.f32 %v2628_v53, %v2050_v23  ;;  %v2057_v12 = vld [vmem:[%s3670_s10 + $0x38] sm:$0xff] }
 0x282   : > { %v2632_v25 = vpop.eup %2631  ;;  %v1892_v63 = vadd.f32 %v1891_v31, %v1779_v56  ;;  %2661 = vtanh.f32 %v1890_v22  ;;  %v2019_v42 = vadd.f32 1.0, %v2630_v6  ;;  %v2056_v56 = vld [vmem:[%s3670_s10 + $0x30] sm:$0xff] }
 0x283   : > { %v1893_v0 = vpop.f32.mrf.mxu1  ;;  %v2634_v3 = vpop.eup %2633  ;;  %2663 = vpow2.f32 %v2422_v8  ;;  %v2059_v40 = vmul.f32 %v2632_v25, %v2051_v7 }
 0x284   : > { %v2636_v5 = vpop.eup %2635  ;;  %v1894_v13 = vadd.f32 %v1893_v0, %v1781_v62  ;;  %2665 = vtanh.f32 %v1892_v63  ;;  %v2020_v45 = vadd.f32 1.0, %v2634_v3 }
 0x285   : > { %v1895_v47 = vpop.f32.mrf.mxu1  ;;  %v2638_v15 = vpop.eup %2637  ;;  %2667 = vrcp.f32 %v1977_v4  ;;  %v2060_v51 = vmul.f32 %v2636_v5, %v2052_v18 }
 0x286   : > { %v2640_v19 = vpop.eup %2639  ;;  %v1896_v59 = vadd.f32 %v1895_v47, %v1783_v9  ;;  %2669 = vtanh.f32 %v1894_v13 }
 0x287   : > { %v2642_v20 = vpop.eup %2641  ;;  %2671 = vrcp.f32 %v1929_v16  ;;  %v2061_v55 = vmul.f32 %v2640_v19, %v2053_v46 }
 0x288   : > { %v2644_v27 = vpop.eup %2643  ;;  %2673 = vtanh.f32 %v1896_v59  ;;  %v2022_v60 = vadd.f32 1.0, %v2642_v20 }
 0x289   : > { %v2646_v17 = vpop.eup %2645  ;;  %2675 = vrcp.f32 %v2018_v50  ;;  %v2062_v35 = vmul.f32 %v2644_v27, %v2054_v52 }
 0x28a   : > { %v2648_v1 = vpop.eup %2647  ;;  %v2066_v33 = vmul.f32 %v2646_v17, %v3651_v14 }
 0x28b   : > { %v2650_v10 = vpop.eup %2649  ;;  %v2023_v53 = vadd.f32 1.0, %v2648_v1 }
 0x28c   : > { %v2652_v37 = vpop.eup %2651  ;;  %v2074_v38 = vadd.f32 %v2066_v33, %v2058_v28  ;;  %v2067_v41 = vmul.f32 %v2650_v10, %v3653_v2  ;;  %v2021_v2 = vadd.f32 1.0, %v2638_v15 }
 0x28d   : > { %v2654_v44 = vpop.eup %2653  ;;  %v2063_v31 = vmul.f32 %v2652_v37, %v2055_v61 }
 0x28e   : > { %v2656_v48 = vpop.eup %2655  ;;  %2677 = vtanh.f32 %v2074_v38  ;;  %2098 = vst [vmem:[%s3685_s11] sm:$0xff] %v2074_v38  ;;  %v2075_v14 = vadd.f32 %v2067_v41, %v2059_v40  ;;  %v2068_v29 = vmul.f32 %v2654_v44, %v3655_v36 }
 0x28f   : > { %v2658_v30 = vpop.eup %2657  ;;  %2679 = vrcp.f32 %v2019_v42  ;;  %v2024_v8 = vadd.f32 1.0, %v2656_v48 }
 0x290   : > { %v2660_v54 = vpop.eup %2659  ;;  %2681 = vtanh.f32 %v2075_v14  ;;  %2099 = vst [vmem:[%s3685_s11 + $0x8] sm:$0xff] %v2075_v14  ;;  %v2076_v34 = vadd.f32 %v2068_v29, %v2060_v51  ;;  %v2069_v57 = vmul.f32 %v2658_v30, %v3657_v32 }
 0x291   : > { %v2662_v58 = vpop.eup %2661  ;;  %2683 = vrcp.f32 %v2020_v45  ;;  %v2064_v62 = vmul.f32 %v2660_v54, %v2056_v56 }
 0x292   : > { %v2664_v26 = vpop.eup %2663  ;;  %2685 = vtanh.f32 %v2076_v34  ;;  %2100 = vst [vmem:[%s3685_s11 + $0x10] sm:$0xff] %v2076_v34  ;;  %v2077_v36 = vadd.f32 %v2069_v57, %v2061_v55  ;;  %v2070_v43 = vmul.f32 %v2662_v58, %v3659_v39 }
 0x293   : > { %v2666_v49 = vpop.eup %2665  ;;  %2687 = vrcp.f32 %v2021_v2  ;;  %v2025_v3 = vadd.f32 1.0, %v2664_v26 }
 0x294   : > { %v2668_v22 = vpop.eup %2667  ;;  %2689 = vtanh.f32 %v2077_v36  ;;  %2101 = vst [vmem:[%s3685_s11 + $0x18] sm:$0xff] %v2077_v36  ;;  %v2078_v32 = vadd.f32 %v2070_v43, %v2062_v35  ;;  %v2071_v6 = vmul.f32 %v2666_v49, %v3661_v11 }
 0x295   : > { %v2670_v24 = vpop.eup %2669  ;;  %2691 = vrcp.f32 %v2022_v60  ;;  %v2065_v4 = vmul.f32 %v2668_v22, %v2057_v12 }
 0x296   : > { %v2672_v39 = vpop.eup %2671  ;;  %2693 = vtanh.f32 %v2078_v32  ;;  %2102 = vst [vmem:[%s3685_s11 + $0x20] sm:$0xff] %v2078_v32  ;;  %v2079_v25 = vadd.f32 %v2071_v6, %v2063_v31  ;;  %v2072_v63 = vmul.f32 %v2670_v24, %v3663_v21 }
 0x297   : > { %v2674_v0 = vpop.eup %2673  ;;  %2695 = vrcp.f32 %v2023_v53 }
 0x298   : > { %2697 = vtanh.f32 %v2079_v25  ;;  %2103 = vst [vmem:[%s3685_s11 + $0x28] sm:$0xff] %v2079_v25  ;;  %v2080_v11 = vadd.f32 %v2072_v63, %v2064_v62  ;;  %v2073_v5 = vmul.f32 %v2674_v0, %v2672_v39  ;;  %v2676_v9 = vpop.eup %2675 }
 0x299   : > { %2699 = vrcp.f32 %v2024_v8 }
 0x29a   : > { %2701 = vtanh.f32 %v2080_v11  ;;  %2104 = vst [vmem:[%s3685_s11 + $0x30] sm:$0xff] %v2080_v11  ;;  %v2081_v13 = vadd.f32 %v2073_v5, %v2065_v4 }
 0x29b   : > { %v2678_v21 = vpop.eup %2677  ;;  %2703 = vrcp.f32 %v2025_v3 }
 0x29c   : > { %v2680_v47 = vpop.eup %2679  ;;  %v2090_v15 = vmul.f32 %v2678_v21, %v2676_v9  ;;  %2705 = vtanh.f32 %v2081_v13  ;;  %2105 = vst [vmem:[%s3685_s11 + $0x38] sm:$0xff] %v2081_v13 }
 0x29d   : > { %v2682_v16 = vpop.eup %2681 }
 0x29e   : > { %2720 = shalt.err (!%p2717_p3)
}
 0x29f   : > { %s2721_s10 = scalar_lea.hbm %s3710_s17, 1024  ;;  %s2725_s16 = scalar_lea.hbm %s3799_s6, 2048 }
 0x2a0   : > { %p2722_p4 = scmp.ne.s32.totalorder %s3710_s17, %s2721_s10  ;;  %p2726_p9 = scmp.lt.s32.totalorder %s3710_s17, %s3799_s6 }
 0x2a1   : > { %p2727_p10 = scmp.lt.s32.totalorder %s2725_s16, %s2721_s10 }
 0x2a2   : > { %p2723_p7 = pnand %p2722_p4, %p2885_p5 }
 0x2a3   : > { %p2728_p11 = por %p2727_p10, %p2726_p9 }
 0x2a4   : > { %p2724_p8 = pneg %p2723_p7 }
 0x2a6   : > { %p2729_p12 = pnand %p2728_p11, %p2724_p8 }
 0x2a8   : > { %2732 = shalt.err (!%p2729_p12)
}
 0x2a9   : > { %s2810_s19 = smov 256   ;;  %v2684_v19 = vpop.eup %2683  ;;  %s278_s13 = scalar_lea.vmem [#allocation3], %s2271_s9  ;;  %v2091_v59 = vmul.f32 %v2682_v16, %v2680_v47 }
 0x2aa   : > { %2437 = dma.vmem_to_hbm [thread:$0]  (%p2885_p5), %s3712_s14, 1024, %s3710_s17, %s2120_s18, %s2810_s19, %s2810_s19, %s2806_s29   ;;  %v2686_v20 = vpop.eup %2685 }
 0x2ab   : > { %2106 = vst [vmem:[%s278_s13] sm:$0xff] %v2090_v15  ;;  %v2688_v23 = vpop.eup %2687  ;;  %2107 = vst [vmem:[%s278_s13 + $0x8] sm:$0xff] %v2091_v59  ;;  %v2092_v27 = vmul.f32 %v2686_v20, %v2684_v19  ;;  %s2133_s9 = sshll.u32 %s278_s13, 4  ;;  %s3850_s14 = sshll.u32 %s2868_s25, 10  ;;  %s3750_s9 = int_to_ptr.vmem [resolvable:$true] %s2133_s9 }
 0x2ac   : > { %v2690_v17 = vpop.eup %2689  ;;  %s3748_s26 = scalar_lea.hbm %s3798_s5, %s3850_s14  ;;  %s2115_s28 = scalar_lea.sflag [#allocation4], %s3674_s12 }
 0x2ad   : > { %v2692_v50 = vpop.eup %2691  ;;  %2108 = vst [vmem:[%s278_s13 + $0x10] sm:$0xff] %v2092_v27  ;;  %v2093_v7 = vmul.f32 %v2690_v17, %v2688_v23  ;;  %s2733_s10 = scalar_lea.vmem %s3750_s9, 1024  ;;  %s2811_s11 = smov [#allocation3]  }
 0x2ae   : > { %v2694_v1 = vpop.eup %2693  ;;  %p2734_p13 = scmp.ne.s32.totalorder %s3750_s9, %s2733_s10  ;;  %s2737_s15 = sshll.u32 %s2811_s11, 4  ;;  %s2738_s15 = int_to_ptr.vmem [resolvable:$false] %s2737_s15 }
 0x2af   : > { %v2696_v28 = vpop.eup %2695  ;;  %2109 = vst [vmem:[%s278_s13 + $0x18] sm:$0xff] %v2093_v7  ;;  %v2094_v33 = vmul.f32 %v2694_v1, %v2692_v50  ;;  %s2739_s25 = scalar_lea.vmem %s2738_s15, 2048  ;;  %p2740_p2 = scmp.lt.s32.totalorder %s3750_s9, %s2738_s15 }
 0x2b0   : > { %v2698_v10 = vpop.eup %2697  ;;  %p2735_p0 = pnand %p2734_p13, %p2885_p5  ;;  %p2741_p3 = scmp.lt.s32.totalorder %s2739_s25, %s2733_s10 }
 0x2b1   : > { %v2700_v42 = vpop.eup %2699  ;;  %2110 = vst [vmem:[%s278_s13 + $0x20] sm:$0xff] %v2094_v33  ;;  %v2095_v18 = vmul.f32 %v2698_v10, %v2696_v28 }
 0x2b2   : > { %v2702_v37 = vpop.eup %2701  ;;  %p2736_p1 = pneg %p2735_p0  ;;  %p2742_p4 = por %p2741_p3, %p2740_p2 }
 0x2b3   : > { %v2704_v38 = vpop.eup %2703  ;;  %2111 = vst [vmem:[%s278_s13 + $0x28] sm:$0xff] %v2095_v18  ;;  %v2096_v40 = vmul.f32 %v2702_v37, %v2700_v42 }
 0x2b4   : > { %v2706_v41 = vpop.eup %2705  ;;  %p2743_p7 = pnand %p2742_p4, %p2736_p1 }
 0x2b5   : > { %2112 = vst [vmem:[%s278_s13 + $0x30] sm:$0xff] %v2096_v40  ;;  %v2097_v44 = vmul.f32 %v2706_v41, %v2704_v38 }
 0x2b7   : > { %2113 = vst [vmem:[%s278_s13 + $0x38] sm:$0xff] %v2097_v44 }
 0x2b8   : > { %2746 = shalt.err (!%p2743_p7)
}
 0x2b9   : > { %s2747_s16 = scalar_lea.hbm %s3748_s26, 1024  ;;  %s2751_s13 = scalar_lea.hbm %s3798_s5, 2048 }
 0x2ba   : > { %p2748_p8 = scmp.ne.s32.totalorder %s3748_s26, %s2747_s16  ;;  %p2752_p11 = scmp.lt.s32.totalorder %s3748_s26, %s3798_s5 }
 0x2bb   : > { %p2753_p12 = scmp.lt.s32.totalorder %s2751_s13, %s2747_s16 }
 0x2bc   : > { %p2749_p9 = pnand %p2748_p8, %p2885_p5 }
 0x2bd   : > { %p2754_p13 = por %p2753_p12, %p2752_p11 }
 0x2be   : > { %p2750_p10 = pneg %p2749_p9 }
 0x2c0   : > { %p2755_p0 = pnand %p2754_p13, %p2750_p10 }
 0x2c2   : > { %2758 = shalt.err (!%p2755_p0)
}
 0x2c3   : > { %2436 = dma.vmem_to_hbm [thread:$0]  (%p2885_p5), %s3750_s9, 1024, %s3748_s26, %s2115_s28, %s2810_s19, %s2810_s19, %s2806_s29  }
 0x2c4 PF: > { %p2447_p1 = scmp.ge.s32.totalorder %s2797_s24, 2  ;;  %s2164_s18 = sand.u32 1, %s2785_s21  }
 0x2c5   : > { %s2165_s10 = scalar_lea.sflag [#allocation4], %s2164_s18 }
 0x2c6   : > { %p2441_p2 = pnand %p2447_p1, %p2889_p6 }
 0x2c8   : > { %p2442_p3 = pneg %p2441_p2 }
 0x2ca   : > { %2776 = dma.done.wait (%p2442_p3), %s2165_s10, 1024  }
 0x2cb   : > { %2778 = vsyncadd (%p2442_p3), %s2165_s10, 4294966272  ;;  %s2174_s11 = scalar_lea.sflag [#allocation6], %s2164_s18 }
 0x2cc   : > { %2780 = dma.done.wait (%p2442_p3), %s2174_s11, 1024  }
 0x2cd   : > { %2782 = vsyncadd (%p2442_p3), %s2174_s11, 4294966272  ;;  %p20_p5 = scmp.ge.s32.totalorder %s2872_s27, 4   ;;  %s3851_s21 = smov %s2789_s22 }
 0x2ce   : > { %s3852_s22 = smov %s2793_s23  ;;  %s3853_s23 = smov %s2883_s30 }
 0x2cf   : > { %s3854_s24 = smov %s2872_s27  ;;  %22 = sbr.rel (!%p20_p5) target bundleno = 5 (0x5), region = 98 }
 0x2d4   :  { %2179 = vsyncpa [#allocation4], 1 }
 0x2d5   :  { %2181 = vsyncpa [#allocation4 + $0x1], 1 }
 0x2d6   :  { %2182 = vsyncpa [#allocation6], 1 }
 0x2d7   :  { %2184 = vsyncpa [#allocation6 + $0x1], 1 }

</bundles_post_ra>
